<compile_context>
chip_gen: v6e
topology: v6e:2x2x1
jax: 0.10.0
libtpu: 0.0.40
codegen_flags: <defaults>
</compile_context>

<pallas_src>
import functools

import jax
import jax.numpy as jnp
from jax import lax
from jax.experimental import pallas as pl
from jax.experimental.pallas import tpu as pltpu


def temporal_attention_kernel(x_ref, g_ref, b_ref, wq_ref, wk_ref, wv_ref,
                              wo_ref, o_ref, *, gb, n, heads, dim_head,
                              dim_valid, scale, eps):
    rows = gb * n                                    # rows handled this grid step
    dim_p = x_ref.shape[-1]                          # lane-padded channel width
    mxu_dtype = wq_ref.dtype                         # bf16 (or f32 fallback)

    # ---- LayerNorm over the TRUE channel width, in f32 ----
    x = x_ref[...].astype(jnp.float32)               # (rows, dim_p); padded lanes are 0
    inv_d = 1.0 / dim_valid
    mu = jnp.sum(x, axis=-1, keepdims=True) * inv_d  # zero padding does not bias the sum
    xc = x - mu
    if dim_valid != dim_p:                           # static branch: mask padded lanes
        lane = lax.broadcasted_iota(jnp.int32, xc.shape, 1)
        xc = jnp.where(lane < dim_valid, xc, 0.0)
    var = jnp.sum(xc * xc, axis=-1, keepdims=True) * inv_d
    xn = (xc * lax.rsqrt(var + eps) * g_ref[...].astype(jnp.float32)
          + b_ref[...].astype(jnp.float32))
    xn = xn.astype(mxu_dtype)

    # ---- Fused q/k/v projections for ALL heads (one full-width MXU matmul each) ----
    q = (jnp.dot(xn, wq_ref[...], preferred_element_type=jnp.float32)
         * scale).astype(mxu_dtype)                  # (rows, hidden)
    k = jnp.dot(xn, wk_ref[...], preferred_element_type=jnp.float32).astype(mxu_dtype)
    v = jnp.dot(xn, wv_ref[...], preferred_element_type=jnp.float32).astype(mxu_dtype)

    # ---- Re-batch heads into a single leading batch dim: (heads*gb, n, dim_head) ----
    # Static lane slices at multiples of dim_head + a sublane-aligned reshape
    # (n % 8 == 0), then the whole attention is two single-batch 3-D einsums.
    def to_batched(t):
        cols = [t[:, h * dim_head:(h + 1) * dim_head] for h in range(heads)]
        return jnp.concatenate(cols, axis=0).reshape(heads * gb, n, dim_head)

    q3, k3, v3 = to_batched(q), to_batched(k), to_batched(v)

    sim = jnp.einsum('bid,bjd->bij', q3, k3,
                     preferred_element_type=jnp.float32)        # (heads*gb, n, n) f32
    sim = sim - jnp.max(sim, axis=-1, keepdims=True)
    p = jnp.exp(sim)
    attn = p * pl.reciprocal(jnp.sum(p, axis=-1, keepdims=True), approx=True)
    o3 = jnp.einsum('bij,bjd->bid', attn.astype(mxu_dtype), v3,
                    preferred_element_type=jnp.float32)         # (heads*gb, n, dim_head)

    # ---- Output projection, batched over heads, accumulated over heads in f32 ----
    # (avoids any lane-axis concatenate; to_out has no bias)
    o4 = o3.reshape(heads, rows, dim_head).astype(mxu_dtype)    # free split of batch dim
    out = jnp.einsum('hrd,hdc->hrc', o4, wo_ref[...],
                     preferred_element_type=jnp.float32)        # (heads, rows, dim_p)
    o_ref[...] = jnp.sum(out, axis=0).astype(o_ref.dtype)


_VMEM_LIMIT_BYTES = 48 * 1024 * 1024        # below v7x's 64 MiB physical, >> step budget
_WORKSET_BUDGET_BYTES = 20 * 1024 * 1024    # per-grid-step working-set budget


def _workset_bytes(rows, dim_p, hidden, heads, n, x_bytes, w_bytes):
    """Rough per-grid-step VMEM working set (pipeline buffers + kernel temporaries)."""
    io = rows * dim_p * (2 * x_bytes + 2 * 4)              # double-buffered x tile + f32 out tile
    weights = (4 * dim_p * hidden + 2 * dim_p) * w_bytes * 2
    tmp = rows * dim_p * (4 + w_bytes + 4 * heads)         # x/xn + per-head out f32
    tmp += rows * hidden * (3 * 4 + 4 * w_bytes + 4)       # q/k/v f32 + bf16 views + o3 f32
    tmp += rows * heads * n * 3 * 4                        # sim / p / attn (f32)
    return io + weights + tmp


def _choose_group_block(BG, N, dim_p, hidden, heads, x_bytes, w_bytes,
                        budget=_WORKSET_BUDGET_BYTES, min_steps=4):
    """Largest divisor of BG whose tile fits the VMEM budget while (when possible)
    keeping >= min_steps grid steps, so v7x's two TensorCores each pipeline >= 2
    'parallel' steps; v5e/v6e simply get a deeper pipeline."""
    divisors = sorted((d for d in range(1, BG + 1) if BG % d == 0), reverse=True)
    fits = [d for d in divisors
            if _workset_bytes(d * N, dim_p, hidden, heads, N, x_bytes, w_bytes) <= budget]
    if not fits:
        fits = [1]
    for want in (min_steps, 2, 1):
        for d in fits:                                     # descending: biggest fitting tile first
            if BG // d >= want:
                return d
    return fits[-1]


def _const_spec(shape, single_buffer):
    """BlockSpec for a VMEM-resident operand whose block index never changes."""
    index_map = lambda g: (0,) * len(shape)
    if single_buffer:
        # Constant block index => one resident copy; skip the useless 2nd pipeline buffer.
        return pl.BlockSpec(shape, index_map, pipeline_mode=pl.Buffered(buffer_count=1))
    return pl.BlockSpec(shape, index_map)


def temporal_attention(x, ln_gamma, ln_beta, wq, wk, wv, wo, *, heads, dim_head,
                       eps=1e-5, group_block=None, mxu_dtype=jnp.bfloat16):
    """x: (B, M, N, dim) -- self-attention over the temporal axis N per (B, M) group."""
    B, M, N, dim = x.shape
    hidden = heads * dim_head
    assert wq.shape == (dim, hidden) and wk.shape == (dim, hidden)
    assert wv.shape == (dim, hidden) and wo.shape == (hidden, dim)
    assert ln_gamma.shape == (1, dim) and ln_beta.shape == (1, dim)
    assert N % 8 == 0, "frame count must be a multiple of 8 (sublane tile)"

    out_dtype = x.dtype
    scale = dim_head ** (-0.5)
    BG = B * M                                          # number of attention groups

    # Lane-dense I/O: pad channels to a multiple of 128 (zero weight rows/cols keep
    # the math identical; LayerNorm masks the padding inside the kernel).
    dim_p = max(128, ((dim + 127) // 128) * 128)
    pad = dim_p - dim

    w_bytes = jnp.dtype(mxu_dtype).itemsize
    if group_block is None:
        group_block = _choose_group_block(BG, N, dim_p, hidden, heads,
                                          x_bytes=w_bytes, w_bytes=w_bytes)
    assert BG % group_block == 0 and (group_block * N) % 8 == 0
    num_blocks = BG // group_block
    rows = group_block * N

    # Flatten to a lane-friendly 2-D slab (LayerNorm / projections are per-row).
    x2 = x.reshape(BG * N, dim)
    gamma, beta = ln_gamma, ln_beta
    wq_p, wk_p, wv_p, wo_p = wq, wk, wv, wo
    if pad:
        x2 = jnp.pad(x2, ((0, 0), (0, pad)))
        gamma = jnp.pad(gamma, ((0, 0), (0, pad)))
        beta = jnp.pad(beta, ((0, 0), (0, pad)))
        wq_p = jnp.pad(wq_p, ((0, pad), (0, 0)))
        wk_p = jnp.pad(wk_p, ((0, pad), (0, 0)))
        wv_p = jnp.pad(wv_p, ((0, pad), (0, 0)))
        wo_p = jnp.pad(wo_p, ((0, 0), (0, pad)))

    # bf16 MXU operands (halves weight DMA + VMEM footprint); LN params stay f32.
    wq_p = wq_p.astype(mxu_dtype)
    wk_p = wk_p.astype(mxu_dtype)
    wv_p = wv_p.astype(mxu_dtype)
    wo3 = wo_p.reshape(heads, dim_head, dim_p).astype(mxu_dtype)   # head-major rows of Wo
    gamma = gamma.astype(jnp.float32)
    beta = beta.astype(jnp.float32)
    # Also ship x in bf16 (halves its DMA) when the tile stays (16,128)-aligned.
    if w_bytes == 2 and rows % 16 == 0:
        x2 = x2.astype(mxu_dtype)

    kernel = functools.partial(
        temporal_attention_kernel, gb=group_block, n=N, heads=heads,
        dim_head=dim_head, dim_valid=dim, scale=scale, eps=eps)

    def run(single_buffer_weights):
        in_specs = [
            pl.BlockSpec((rows, dim_p), lambda g: (g, 0)),                 # x rows
            _const_spec((1, dim_p), single_buffer_weights),                # LN gamma (resident)
            _const_spec((1, dim_p), single_buffer_weights),                # LN beta  (resident)
            _const_spec((dim_p, hidden), single_buffer_weights),           # Wq (resident)
            _const_spec((dim_p, hidden), single_buffer_weights),           # Wk (resident)
            _const_spec((dim_p, hidden), single_buffer_weights),           # Wv (resident)
            _const_spec((heads, dim_head, dim_p), single_buffer_weights),  # Wo, head-major
        ]
        return pl.pallas_call(
            kernel,
            out_shape=jax.ShapeDtypeStruct((BG * N, dim_p), out_dtype),
            grid_spec=pltpu.PrefetchScalarGridSpec(
                num_scalar_prefetch=0,
                grid=(num_blocks,),
                in_specs=in_specs,
                out_specs=pl.BlockSpec((rows, dim_p), lambda g: (g, 0)),
            ),
            compiler_params=pltpu.CompilerParams(
                dimension_semantics=("parallel",),
                vmem_limit_bytes=_VMEM_LIMIT_BYTES),
        )(x2, gamma, beta, wq_p, wk_p, wv_p, wo3)

    try:
        out2 = run(True)
    except Exception:   # this JAX build rejects buffer_count=1 in the implicit pipeline
        out2 = run(False)

    if pad:
        out2 = out2[:, :dim]
    return out2.reshape(B, M, N, dim)


def reference(x, g, b, wq, wk, wv, wo, *, heads, dim_head, eps=1e-5):
    """Pure-JAX (f32) mirror of TemporalAttention.forward (cond=None, pos_bias=None)."""
    B, M, N, dim = x.shape
    mu = jnp.mean(x, axis=-1, keepdims=True)
    var = jnp.mean((x - mu) ** 2, axis=-1, keepdims=True)
    xn = (x - mu) / jnp.sqrt(var + eps) * g[0] + b[0]

    q = xn @ wq
    k = xn @ wk
    v = xn @ wv

    def split(t):
        return t.reshape(B * M, N, heads, dim_head).transpose(0, 2, 1, 3)

    q, k, v = split(q), split(k), split(v)          # (B*M, H, N, d)
    q = q * dim_head ** (-0.5)
    sim = jnp.einsum('ghid,ghjd->ghij', q, k)
    sim = sim - jnp.max(sim, axis=-1, keepdims=True)
    attn = jax.nn.softmax(sim, axis=-1)
    out = jnp.einsum('ghij,ghjd->ghid', attn, v)
    out = out.transpose(0, 2, 1, 3).reshape(B, M, N, heads * dim_head)
    return out @ wo


if __name__ == "__main__":
    # Small shapes consistent with the module defaults (heads=4, dim_head=32).
    B, M, N, dim = 2, 4, 8, 64          # batch, spatial positions, frames, channels
    heads, dim_head = 4, 32
    hidden = heads * dim_head

    key = jax.random.PRNGKey(0)
    kx, kg, kb, k1, k2, k3, k4 = jax.random.split(key, 7)

    x = jax.random.normal(kx, (B, M, N, dim), dtype=jnp.float32)
    ln_gamma = (1.0 + 0.1 * jax.random.normal(kg, (1, dim))).astype(jnp.float32)
    ln_beta = (0.1 * jax.random.normal(kb, (1, dim))).astype(jnp.float32)
    wq = jax.random.normal(k1, (dim, hidden), dtype=jnp.float32) * 0.05
    wk = jax.random.normal(k2, (dim, hidden), dtype=jnp.float32) * 0.05
    wv = jax.random.normal(k3, (dim, hidden), dtype=jnp.float32) * 0.05
    wo = jax.random.normal(k4, (hidden, dim), dtype=jnp.float32) * 0.05

    out = temporal_attention(x, ln_gamma, ln_beta, wq, wk, wv, wo,
                             heads=heads, dim_head=dim_head)
    out = jax.block_until_ready(out)

    ref = reference(x, ln_gamma, ln_beta, wq, wk, wv, wo,
                    heads=heads, dim_head=dim_head)
    assert out.shape == (B, M, N, dim)
    # bf16 MXU operands + EUP approximate softmax reciprocal => bf16-class tolerance
    # against the f32 reference.
    assert jnp.allclose(out, ref, rtol=2e-2, atol=2e-2), "mismatch vs reference"

    print("KERNEL_OK")
</pallas_src>

<mosaic_0001>
module attributes {stable_mosaic.version = 11 : i64} {
  func.func @temporal_attention_kernel(%arg0: i32, %arg1: memref<16x128xbf16, #tpu.memory_space<vmem>>, %arg2: memref<1x128xf32, #tpu.memory_space<vmem>>, %arg3: memref<1x128xf32, #tpu.memory_space<vmem>>, %arg4: memref<128x128xbf16, #tpu.memory_space<vmem>>, %arg5: memref<128x128xbf16, #tpu.memory_space<vmem>>, %arg6: memref<128x128xbf16, #tpu.memory_space<vmem>>, %arg7: memref<4x32x128xbf16, #tpu.memory_space<vmem>>, %arg8: memref<16x128xf32, #tpu.memory_space<vmem>>) attributes {dimension_semantics = [#tpu.dimension_semantics<parallel>], iteration_bounds = array<i64: 4>, scalar_prefetch = 0 : i64, scratch_operands = 0 : i64, tpu.core_type = #tpu.core_type<tc>, window_params = [{transform_indices = @transform_0, window_bounds = array<i64: 16, 128>}, {pipeline_mode = #tpu.pipeline_mode<synchronous>, transform_indices = @transform_1, window_bounds = array<i64: 1, 128>}, {pipeline_mode = #tpu.pipeline_mode<synchronous>, transform_indices = @transform_2, window_bounds = array<i64: 1, 128>}, {pipeline_mode = #tpu.pipeline_mode<synchronous>, transform_indices = @transform_3, window_bounds = array<i64: 128, 128>}, {pipeline_mode = #tpu.pipeline_mode<synchronous>, transform_indices = @transform_4, window_bounds = array<i64: 128, 128>}, {pipeline_mode = #tpu.pipeline_mode<synchronous>, transform_indices = @transform_5, window_bounds = array<i64: 128, 128>}, {pipeline_mode = #tpu.pipeline_mode<synchronous>, transform_indices = @transform_6, window_bounds = array<i64: 4, 32, 128>}, {transform_indices = @transform_7, window_bounds = array<i64: 16, 128>}]} {
    %c0 = arith.constant 0 : index
    %c0_0 = arith.constant 0 : index
    %0 = vector.load %arg1[%c0, %c0_0] : memref<16x128xbf16, #tpu.memory_space<vmem>>, vector<16x128xbf16>
    %1 = arith.extf %0 : vector<16x128xbf16> to vector<16x128xf32>
    %cst = arith.constant dense<0.000000e+00> : vector<16xf32>
    %2 = vector.multi_reduction <add>, %1, %cst [1] : vector<16x128xf32> to vector<16xf32>
    %3 = vector.shape_cast %2 : vector<16xf32> to vector<16x1xf32>
    %cst_1 = arith.constant 1.562500e-02 : f32
    %4 = vector.broadcast %cst_1 : f32 to vector<16x1xf32>
    %5 = arith.mulf %3, %4 : vector<16x1xf32>
    %6 = vector.broadcast %5 : vector<16x1xf32> to vector<16x128xf32>
    %7 = arith.subf %1, %6 : vector<16x128xf32>
    %8 = tpu.iota {dimensions = array<i32: 1>} : vector<16x128xi32>
    %c64_i32 = arith.constant 64 : i32
    %9 = vector.broadcast %c64_i32 : i32 to vector<16x128xi32>
    %10 = arith.cmpi slt, %8, %9 : vector<16x128xi32>
    %cst_2 = arith.constant 0.000000e+00 : f32
    %11 = vector.broadcast %cst_2 : f32 to vector<16x128xf32>
    %12 = arith.select %10, %7, %11 : vector<16x128xi1>, vector<16x128xf32>
    %13 = arith.mulf %12, %12 : vector<16x128xf32>
    %cst_3 = arith.constant dense<0.000000e+00> : vector<16xf32>
    %14 = vector.multi_reduction <add>, %13, %cst_3 [1] : vector<16x128xf32> to vector<16xf32>
    %15 = vector.shape_cast %14 : vector<16xf32> to vector<16x1xf32>
    %cst_4 = arith.constant 1.562500e-02 : f32
    %16 = vector.broadcast %cst_4 : f32 to vector<16x1xf32>
    %17 = arith.mulf %15, %16 : vector<16x1xf32>
    %cst_5 = arith.constant 9.99999974E-6 : f32
    %18 = vector.broadcast %cst_5 : f32 to vector<16x1xf32>
    %19 = arith.addf %17, %18 : vector<16x1xf32>
    %20 = math.rsqrt %19 : vector<16x1xf32>
    %21 = vector.broadcast %20 : vector<16x1xf32> to vector<16x128xf32>
    %22 = arith.mulf %12, %21 : vector<16x128xf32>
    %c0_6 = arith.constant 0 : index
    %c0_7 = arith.constant 0 : index
    %23 = vector.load %arg2[%c0_6, %c0_7] : memref<1x128xf32, #tpu.memory_space<vmem>>, vector<1x128xf32>
    %24 = vector.broadcast %23 : vector<1x128xf32> to vector<16x128xf32>
    %25 = arith.mulf %22, %24 : vector<16x128xf32>
    %c0_8 = arith.constant 0 : index
    %c0_9 = arith.constant 0 : index
    %26 = vector.load %arg3[%c0_8, %c0_9] : memref<1x128xf32, #tpu.memory_space<vmem>>, vector<1x128xf32>
    %27 = vector.broadcast %26 : vector<1x128xf32> to vector<16x128xf32>
    %28 = arith.addf %25, %27 : vector<16x128xf32>
    %29 = arith.truncf %28 : vector<16x128xf32> to vector<16x128xbf16>
    %c0_10 = arith.constant 0 : index
    %c0_11 = arith.constant 0 : index
    %30 = vector.load %arg4[%c0_10, %c0_11] : memref<128x128xbf16, #tpu.memory_space<vmem>>, vector<128x128xbf16>
    %cst_12 = arith.constant dense<0.000000e+00> : vector<16x128xf32>
    %31 = tpu.matmul %29, %30, %cst_12 {dimension_numbers = #tpu.dot_dimension_numbers<[1], [0], [0], [1], [0, 0, 1, 1], [], []>} : vector<16x128xbf16>, vector<128x128xbf16>, vector<16x128xf32> -> vector<16x128xf32>
    %cst_13 = arith.constant 0.176776692 : f32
    %32 = vector.broadcast %cst_13 : f32 to vector<16x128xf32>
    %33 = arith.mulf %31, %32 : vector<16x128xf32>
    %34 = arith.truncf %33 : vector<16x128xf32> to vector<16x128xbf16>
    %c0_14 = arith.constant 0 : index
    %c0_15 = arith.constant 0 : index
    %35 = vector.load %arg5[%c0_14, %c0_15] : memref<128x128xbf16, #tpu.memory_space<vmem>>, vector<128x128xbf16>
    %cst_16 = arith.constant dense<0.000000e+00> : vector<16x128xf32>
    %36 = tpu.matmul %29, %35, %cst_16 {dimension_numbers = #tpu.dot_dimension_numbers<[1], [0], [0], [1], [0, 0, 1, 1], [], []>} : vector<16x128xbf16>, vector<128x128xbf16>, vector<16x128xf32> -> vector<16x128xf32>
    %37 = arith.truncf %36 : vector<16x128xf32> to vector<16x128xbf16>
    %c0_17 = arith.constant 0 : index
    %c0_18 = arith.constant 0 : index
    %38 = vector.load %arg6[%c0_17, %c0_18] : memref<128x128xbf16, #tpu.memory_space<vmem>>, vector<128x128xbf16>
    %cst_19 = arith.constant dense<0.000000e+00> : vector<16x128xf32>
    %39 = tpu.matmul %29, %38, %cst_19 {dimension_numbers = #tpu.dot_dimension_numbers<[1], [0], [0], [1], [0, 0, 1, 1], [], []>} : vector<16x128xbf16>, vector<128x128xbf16>, vector<16x128xf32> -> vector<16x128xf32>
    %40 = arith.truncf %39 : vector<16x128xf32> to vector<16x128xbf16>
    %41 = vector.extract_strided_slice %34 {offsets = [0, 0], sizes = [16, 32], strides = [1, 1]} : vector<16x128xbf16> to vector<16x32xbf16>
    %42 = vector.extract_strided_slice %34 {offsets = [0, 32], sizes = [16, 32], strides = [1, 1]} : vector<16x128xbf16> to vector<16x32xbf16>
    %43 = vector.extract_strided_slice %34 {offsets = [0, 64], sizes = [16, 32], strides = [1, 1]} : vector<16x128xbf16> to vector<16x32xbf16>
    %44 = vector.extract_strided_slice %34 {offsets = [0, 96], sizes = [16, 32], strides = [1, 1]} : vector<16x128xbf16> to vector<16x32xbf16>
    %45 = tpu.concatenate %41, %42, %43, %44 in 0 : vector<16x32xbf16>, vector<16x32xbf16>, vector<16x32xbf16>, vector<16x32xbf16> -> vector<64x32xbf16>
    %46 = vector.shape_cast %45 : vector<64x32xbf16> to vector<8x8x32xbf16>
    %47 = vector.extract_strided_slice %37 {offsets = [0, 0], sizes = [16, 32], strides = [1, 1]} : vector<16x128xbf16> to vector<16x32xbf16>
    %48 = vector.extract_strided_slice %37 {offsets = [0, 32], sizes = [16, 32], strides = [1, 1]} : vector<16x128xbf16> to vector<16x32xbf16>
    %49 = vector.extract_strided_slice %37 {offsets = [0, 64], sizes = [16, 32], strides = [1, 1]} : vector<16x128xbf16> to vector<16x32xbf16>
    %50 = vector.extract_strided_slice %37 {offsets = [0, 96], sizes = [16, 32], strides = [1, 1]} : vector<16x128xbf16> to vector<16x32xbf16>
    %51 = tpu.concatenate %47, %48, %49, %50 in 0 : vector<16x32xbf16>, vector<16x32xbf16>, vector<16x32xbf16>, vector<16x32xbf16> -> vector<64x32xbf16>
    %52 = vector.shape_cast %51 : vector<64x32xbf16> to vector<8x8x32xbf16>
    %53 = vector.extract_strided_slice %40 {offsets = [0, 0], sizes = [16, 32], strides = [1, 1]} : vector<16x128xbf16> to vector<16x32xbf16>
    %54 = vector.extract_strided_slice %40 {offsets = [0, 32], sizes = [16, 32], strides = [1, 1]} : vector<16x128xbf16> to vector<16x32xbf16>
    %55 = vector.extract_strided_slice %40 {offsets = [0, 64], sizes = [16, 32], strides = [1, 1]} : vector<16x128xbf16> to vector<16x32xbf16>
    %56 = vector.extract_strided_slice %40 {offsets = [0, 96], sizes = [16, 32], strides = [1, 1]} : vector<16x128xbf16> to vector<16x32xbf16>
    %57 = tpu.concatenate %53, %54, %55, %56 in 0 : vector<16x32xbf16>, vector<16x32xbf16>, vector<16x32xbf16>, vector<16x32xbf16> -> vector<64x32xbf16>
    %58 = vector.shape_cast %57 : vector<64x32xbf16> to vector<8x8x32xbf16>
    "tpu.trace_start"() <{level = 10 : i32, message = "bid,bjd->bij"}> : () -> ()
    %cst_20 = arith.constant dense<0.000000e+00> : vector<8x8x8xf32>
    %59 = tpu.matmul %46, %52, %cst_20 {dimension_numbers = #tpu.dot_dimension_numbers<[2], [2], [1], [1], [0, 0, 0, 1, 1, 1], [0], [0]>} : vector<8x8x32xbf16>, vector<8x8x32xbf16>, vector<8x8x8xf32> -> vector<8x8x8xf32>
    "tpu.trace_stop"() : () -> ()
    %cst_21 = arith.constant dense<0xFF800000> : vector<8x8xf32>
    %60 = vector.multi_reduction <maximumf>, %59, %cst_21 [2] : vector<8x8x8xf32> to vector<8x8xf32>
    %61 = vector.shape_cast %60 : vector<8x8xf32> to vector<8x8x1xf32>
    %62 = vector.broadcast %61 : vector<8x8x1xf32> to vector<8x8x8xf32>
    %63 = arith.subf %59, %62 : vector<8x8x8xf32>
    %64 = math.exp %63 : vector<8x8x8xf32>
    %cst_22 = arith.constant dense<0.000000e+00> : vector<8x8xf32>
    %65 = vector.multi_reduction <add>, %64, %cst_22 [2] : vector<8x8x8xf32> to vector<8x8xf32>
    %66 = vector.shape_cast %65 : vector<8x8xf32> to vector<8x8x1xf32>
    %67 = tpu.reciprocal %66 {approx = true} : vector<8x8x1xf32> -> vector<8x8x1xf32>
    %68 = vector.broadcast %67 : vector<8x8x1xf32> to vector<8x8x8xf32>
    %69 = arith.mulf %64, %68 : vector<8x8x8xf32>
    %70 = arith.truncf %69 : vector<8x8x8xf32> to vector<8x8x8xbf16>
    "tpu.trace_start"() <{level = 10 : i32, message = "bij,bjd->bid"}> : () -> ()
    %cst_23 = arith.constant dense<0.000000e+00> : vector<8x8x32xf32>
    %71 = tpu.matmul %70, %58, %cst_23 {dimension_numbers = #tpu.dot_dimension_numbers<[2], [1], [1], [2], [0, 0, 0, 1, 1, 2], [0], [0]>} : vector<8x8x8xbf16>, vector<8x8x32xbf16>, vector<8x8x32xf32> -> vector<8x8x32xf32>
    "tpu.trace_stop"() : () -> ()
    %72 = vector.shape_cast %71 : vector<8x8x32xf32> to vector<4x16x32xf32>
    %73 = arith.truncf %72 : vector<4x16x32xf32> to vector<4x16x32xbf16>
    %c0_24 = arith.constant 0 : index
    %c0_25 = arith.constant 0 : index
    %c0_26 = arith.constant 0 : index
    %74 = vector.load %arg7[%c0_24, %c0_25, %c0_26] : memref<4x32x128xbf16, #tpu.memory_space<vmem>>, vector<4x32x128xbf16>
    "tpu.trace_start"() <{level = 10 : i32, message = "hrd,hdc->hrc"}> : () -> ()
    %cst_27 = arith.constant dense<0.000000e+00> : vector<4x16x128xf32>
    %75 = tpu.matmul %73, %74, %cst_27 {dimension_numbers = #tpu.dot_dimension_numbers<[2], [1], [1], [2], [0, 0, 0, 1, 1, 2], [0], [0]>} : vector<4x16x32xbf16>, vector<4x32x128xbf16>, vector<4x16x128xf32> -> vector<4x16x128xf32>
    "tpu.trace_stop"() : () -> ()
    %cst_28 = arith.constant dense<0.000000e+00> : vector<16x128xf32>
    %76 = vector.multi_reduction <add>, %75, %cst_28 [0] : vector<4x16x128xf32> to vector<16x128xf32>
    %c0_29 = arith.constant 0 : index
    %c0_30 = arith.constant 0 : index
    %77 = vector.load %arg8[%c0_29, %c0_30] : memref<16x128xf32, #tpu.memory_space<vmem>>, vector<16x128xf32>
    tpu.vector_store %arg8[%c0_29, %c0_30], %76 {strides = array<i32>} : memref<16x128xf32, #tpu.memory_space<vmem>>, vector<16x128xf32>,
    return
  }
  func.func @transform_0(%arg0: i32) -> (i32, i32) {
    %c0_i32 = arith.constant 0 : i32
    %c0_i32_0 = arith.constant 0 : i32
    return %arg0, %c0_i32 : i32, i32
  }
  func.func @transform_1(%arg0: i32) -> (i32, i32) {
    %c0_i32 = arith.constant 0 : i32
    %c0_i32_0 = arith.constant 0 : i32
    %c0_i32_1 = arith.constant 0 : i32
    return %c0_i32, %c0_i32_0 : i32, i32
  }
  func.func @transform_2(%arg0: i32) -> (i32, i32) {
    %c0_i32 = arith.constant 0 : i32
    %c0_i32_0 = arith.constant 0 : i32
    %c0_i32_1 = arith.constant 0 : i32
    return %c0_i32, %c0_i32_0 : i32, i32
  }
  func.func @transform_3(%arg0: i32) -> (i32, i32) {
    %c0_i32 = arith.constant 0 : i32
    %c0_i32_0 = arith.constant 0 : i32
    %c0_i32_1 = arith.constant 0 : i32
    return %c0_i32, %c0_i32_0 : i32, i32
  }
  func.func @transform_4(%arg0: i32) -> (i32, i32) {
    %c0_i32 = arith.constant 0 : i32
    %c0_i32_0 = arith.constant 0 : i32
    %c0_i32_1 = arith.constant 0 : i32
    return %c0_i32, %c0_i32_0 : i32, i32
  }
  func.func @transform_5(%arg0: i32) -> (i32, i32) {
    %c0_i32 = arith.constant 0 : i32
    %c0_i32_0 = arith.constant 0 : i32
    %c0_i32_1 = arith.constant 0 : i32
    return %c0_i32, %c0_i32_0 : i32, i32
  }
  func.func @transform_6(%arg0: i32) -> (i32, i32, i32) {
    %c0_i32 = arith.constant 0 : i32
    %c0_i32_0 = arith.constant 0 : i32
    %c0_i32_1 = arith.constant 0 : i32
    %c0_i32_2 = arith.constant 0 : i32
    return %c0_i32, %c0_i32_0, %c0_i32_1 : i32, i32, i32
  }
  func.func @transform_7(%arg0: i32) -> (i32, i32) {
    %c0_i32 = arith.constant 0 : i32
    %c0_i32_0 = arith.constant 0 : i32
    return %arg0, %c0_i32 : i32, i32
  }
}

module attributes {stable_mosaic.version = 11 : i64} {
  func.func @temporal_attention_kernel(%arg0: i32, %arg1: memref<16x128xbf16, #tpu.memory_space<vmem>>, %arg2: memref<1x128xf32, #tpu.memory_space<vmem>>, %arg3: memref<1x128xf32, #tpu.memory_space<vmem>>, %arg4: memref<128x128xbf16, #tpu.memory_space<vmem>>, %arg5: memref<128x128xbf16, #tpu.memory_space<vmem>>, %arg6: memref<128x128xbf16, #tpu.memory_space<vmem>>, %arg7: memref<4x32x128xbf16, #tpu.memory_space<vmem>>, %arg8: memref<16x128xf32, #tpu.memory_space<vmem>>) attributes {dimension_semantics = [#tpu.dimension_semantics<parallel>], iteration_bounds = array<i64: 4>, scalar_prefetch = 0 : i64, scratch_operands = 0 : i64, tpu.core_type = #tpu.core_type<tc>, window_params = [{transform_indices = @transform_0, window_bounds = array<i64: 16, 128>}, {pipeline_mode = #tpu.pipeline_mode<synchronous>, transform_indices = @transform_1, window_bounds = array<i64: 1, 128>}, {pipeline_mode = #tpu.pipeline_mode<synchronous>, transform_indices = @transform_2, window_bounds = array<i64: 1, 128>}, {pipeline_mode = #tpu.pipeline_mode<synchronous>, transform_indices = @transform_3, window_bounds = array<i64: 128, 128>}, {pipeline_mode = #tpu.pipeline_mode<synchronous>, transform_indices = @transform_4, window_bounds = array<i64: 128, 128>}, {pipeline_mode = #tpu.pipeline_mode<synchronous>, transform_indices = @transform_5, window_bounds = array<i64: 128, 128>}, {pipeline_mode = #tpu.pipeline_mode<synchronous>, transform_indices = @transform_6, window_bounds = array<i64: 4, 32, 128>}, {transform_indices = @transform_7, window_bounds = array<i64: 16, 128>}]} {
    %c0 = arith.constant 0 : index
    %c0_0 = arith.constant 0 : index
    %0 = vector.load %arg1[%c0, %c0_0] : memref<16x128xbf16, #tpu.memory_space<vmem>>, vector<16x128xbf16>
    %1 = arith.extf %0 : vector<16x128xbf16> to vector<16x128xf32>
    %cst = arith.constant dense<0.000000e+00> : vector<16xf32>
    %2 = vector.multi_reduction <add>, %1, %cst [1] : vector<16x128xf32> to vector<16xf32>
    %3 = vector.shape_cast %2 : vector<16xf32> to vector<16x1xf32>
    %cst_1 = arith.constant 1.562500e-02 : f32
    %4 = vector.broadcast %cst_1 : f32 to vector<16x1xf32>
    %5 = arith.mulf %3, %4 : vector<16x1xf32>
    %6 = vector.broadcast %5 : vector<16x1xf32> to vector<16x128xf32>
    %7 = arith.subf %1, %6 : vector<16x128xf32>
    %8 = tpu.iota {dimensions = array<i32: 1>} : vector<16x128xi32>
    %c64_i32 = arith.constant 64 : i32
    %9 = vector.broadcast %c64_i32 : i32 to vector<16x128xi32>
    %10 = arith.cmpi slt, %8, %9 : vector<16x128xi32>
    %cst_2 = arith.constant 0.000000e+00 : f32
    %11 = vector.broadcast %cst_2 : f32 to vector<16x128xf32>
    %12 = arith.select %10, %7, %11 : vector<16x128xi1>, vector<16x128xf32>
    %13 = arith.mulf %12, %12 : vector<16x128xf32>
    %cst_3 = arith.constant dense<0.000000e+00> : vector<16xf32>
    %14 = vector.multi_reduction <add>, %13, %cst_3 [1] : vector<16x128xf32> to vector<16xf32>
    %15 = vector.shape_cast %14 : vector<16xf32> to vector<16x1xf32>
    %cst_4 = arith.constant 1.562500e-02 : f32
    %16 = vector.broadcast %cst_4 : f32 to vector<16x1xf32>
    %17 = arith.mulf %15, %16 : vector<16x1xf32>
    %cst_5 = arith.constant 9.99999974E-6 : f32
    %18 = vector.broadcast %cst_5 : f32 to vector<16x1xf32>
    %19 = arith.addf %17, %18 : vector<16x1xf32>
    %20 = math.rsqrt %19 : vector<16x1xf32>
    %21 = vector.broadcast %20 : vector<16x1xf32> to vector<16x128xf32>
    %22 = arith.mulf %12, %21 : vector<16x128xf32>
    %c0_6 = arith.constant 0 : index
    %c0_7 = arith.constant 0 : index
    %23 = vector.load %arg2[%c0_6, %c0_7] : memref<1x128xf32, #tpu.memory_space<vmem>>, vector<1x128xf32>
    %24 = vector.broadcast %23 : vector<1x128xf32> to vector<16x128xf32>
    %25 = arith.mulf %22, %24 : vector<16x128xf32>
    %c0_8 = arith.constant 0 : index
    %c0_9 = arith.constant 0 : index
    %26 = vector.load %arg3[%c0_8, %c0_9] : memref<1x128xf32, #tpu.memory_space<vmem>>, vector<1x128xf32>
    %27 = vector.broadcast %26 : vector<1x128xf32> to vector<16x128xf32>
    %28 = arith.addf %25, %27 : vector<16x128xf32>
    %29 = arith.truncf %28 : vector<16x128xf32> to vector<16x128xbf16>
    %c0_10 = arith.constant 0 : index
    %c0_11 = arith.constant 0 : index
    %30 = vector.load %arg4[%c0_10, %c0_11] : memref<128x128xbf16, #tpu.memory_space<vmem>>, vector<128x128xbf16>
    %cst_12 = arith.constant dense<0.000000e+00> : vector<16x128xf32>
    %31 = tpu.matmul %29, %30, %cst_12 {dimension_numbers = #tpu.dot_dimension_numbers<[1], [0], [0], [1], [0, 0, 1, 1], [], []>} : vector<16x128xbf16>, vector<128x128xbf16>, vector<16x128xf32> -> vector<16x128xf32>
    %cst_13 = arith.constant 0.176776692 : f32
    %32 = vector.broadcast %cst_13 : f32 to vector<16x128xf32>
    %33 = arith.mulf %31, %32 : vector<16x128xf32>
    %34 = arith.truncf %33 : vector<16x128xf32> to vector<16x128xbf16>
    %c0_14 = arith.constant 0 : index
    %c0_15 = arith.constant 0 : index
    %35 = vector.load %arg5[%c0_14, %c0_15] : memref<128x128xbf16, #tpu.memory_space<vmem>>, vector<128x128xbf16>
    %cst_16 = arith.constant dense<0.000000e+00> : vector<16x128xf32>
    %36 = tpu.matmul %29, %35, %cst_16 {dimension_numbers = #tpu.dot_dimension_numbers<[1], [0], [0], [1], [0, 0, 1, 1], [], []>} : vector<16x128xbf16>, vector<128x128xbf16>, vector<16x128xf32> -> vector<16x128xf32>
    %37 = arith.truncf %36 : vector<16x128xf32> to vector<16x128xbf16>
    %c0_17 = arith.constant 0 : index
    %c0_18 = arith.constant 0 : index
    %38 = vector.load %arg6[%c0_17, %c0_18] : memref<128x128xbf16, #tpu.memory_space<vmem>>, vector<128x128xbf16>
    %cst_19 = arith.constant dense<0.000000e+00> : vector<16x128xf32>
    %39 = tpu.matmul %29, %38, %cst_19 {dimension_numbers = #tpu.dot_dimension_numbers<[1], [0], [0], [1], [0, 0, 1, 1], [], []>} : vector<16x128xbf16>, vector<128x128xbf16>, vector<16x128xf32> -> vector<16x128xf32>
    %40 = arith.truncf %39 : vector<16x128xf32> to vector<16x128xbf16>
    %41 = vector.extract_strided_slice %34 {offsets = [0, 0], sizes = [16, 32], strides = [1, 1]} : vector<16x128xbf16> to vector<16x32xbf16>
    %42 = vector.extract_strided_slice %34 {offsets = [0, 32], sizes = [16, 32], strides = [1, 1]} : vector<16x128xbf16> to vector<16x32xbf16>
    %43 = vector.extract_strided_slice %34 {offsets = [0, 64], sizes = [16, 32], strides = [1, 1]} : vector<16x128xbf16> to vector<16x32xbf16>
    %44 = vector.extract_strided_slice %34 {offsets = [0, 96], sizes = [16, 32], strides = [1, 1]} : vector<16x128xbf16> to vector<16x32xbf16>
    %45 = tpu.concatenate %41, %42, %43, %44 in 0 : vector<16x32xbf16>, vector<16x32xbf16>, vector<16x32xbf16>, vector<16x32xbf16> -> vector<64x32xbf16>
    %46 = vector.shape_cast %45 : vector<64x32xbf16> to vector<8x8x32xbf16>
    %47 = vector.extract_strided_slice %37 {offsets = [0, 0], sizes = [16, 32], strides = [1, 1]} : vector<16x128xbf16> to vector<16x32xbf16>
    %48 = vector.extract_strided_slice %37 {offsets = [0, 32], sizes = [16, 32], strides = [1, 1]} : vector<16x128xbf16> to vector<16x32xbf16>
    %49 = vector.extract_strided_slice %37 {offsets = [0, 64], sizes = [16, 32], strides = [1, 1]} : vector<16x128xbf16> to vector<16x32xbf16>
    %50 = vector.extract_strided_slice %37 {offsets = [0, 96], sizes = [16, 32], strides = [1, 1]} : vector<16x128xbf16> to vector<16x32xbf16>
    %51 = tpu.concatenate %47, %48, %49, %50 in 0 : vector<16x32xbf16>, vector<16x32xbf16>, vector<16x32xbf16>, vector<16x32xbf16> -> vector<64x32xbf16>
    %52 = vector.shape_cast %51 : vector<64x32xbf16> to vector<8x8x32xbf16>
    %53 = vector.extract_strided_slice %40 {offsets = [0, 0], sizes = [16, 32], strides = [1, 1]} : vector<16x128xbf16> to vector<16x32xbf16>
    %54 = vector.extract_strided_slice %40 {offsets = [0, 32], sizes = [16, 32], strides = [1, 1]} : vector<16x128xbf16> to vector<16x32xbf16>
    %55 = vector.extract_strided_slice %40 {offsets = [0, 64], sizes = [16, 32], strides = [1, 1]} : vector<16x128xbf16> to vector<16x32xbf16>
    %56 = vector.extract_strided_slice %40 {offsets = [0, 96], sizes = [16, 32], strides = [1, 1]} : vector<16x128xbf16> to vector<16x32xbf16>
    %57 = tpu.concatenate %53, %54, %55, %56 in 0 : vector<16x32xbf16>, vector<16x32xbf16>, vector<16x32xbf16>, vector<16x32xbf16> -> vector<64x32xbf16>
    %58 = vector.shape_cast %57 : vector<64x32xbf16> to vector<8x8x32xbf16>
    "tpu.trace_start"() <{level = 10 : i32, message = "bid,bjd->bij"}> : () -> ()
    %cst_20 = arith.constant dense<0.000000e+00> : vector<8x8x8xf32>
    %59 = tpu.matmul %46, %52, %cst_20 {dimension_numbers = #tpu.dot_dimension_numbers<[2], [2], [1], [1], [0, 0, 0, 1, 1, 1], [0], [0]>} : vector<8x8x32xbf16>, vector<8x8x32xbf16>, vector<8x8x8xf32> -> vector<8x8x8xf32>
    "tpu.trace_stop"() : () -> ()
    %cst_21 = arith.constant dense<0xFF800000> : vector<8x8xf32>
    %60 = vector.multi_reduction <maximumf>, %59, %cst_21 [2] : vector<8x8x8xf32> to vector<8x8xf32>
    %61 = vector.shape_cast %60 : vector<8x8xf32> to vector<8x8x1xf32>
    %62 = vector.broadcast %61 : vector<8x8x1xf32> to vector<8x8x8xf32>
    %63 = arith.subf %59, %62 : vector<8x8x8xf32>
    %64 = math.exp %63 : vector<8x8x8xf32>
    %cst_22 = arith.constant dense<0.000000e+00> : vector<8x8xf32>
    %65 = vector.multi_reduction <add>, %64, %cst_22 [2] : vector<8x8x8xf32> to vector<8x8xf32>
    %66 = vector.shape_cast %65 : vector<8x8xf32> to vector<8x8x1xf32>
    %67 = tpu.reciprocal %66 {approx = true} : vector<8x8x1xf32> -> vector<8x8x1xf32>
    %68 = vector.broadcast %67 : vector<8x8x1xf32> to vector<8x8x8xf32>
    %69 = arith.mulf %64, %68 : vector<8x8x8xf32>
    %70 = arith.truncf %69 : vector<8x8x8xf32> to vector<8x8x8xbf16>
    "tpu.trace_start"() <{level = 10 : i32, message = "bij,bjd->bid"}> : () -> ()
    %cst_23 = arith.constant dense<0.000000e+00> : vector<8x8x32xf32>
    %71 = tpu.matmul %70, %58, %cst_23 {dimension_numbers = #tpu.dot_dimension_numbers<[2], [1], [1], [2], [0, 0, 0, 1, 1, 2], [0], [0]>} : vector<8x8x8xbf16>, vector<8x8x32xbf16>, vector<8x8x32xf32> -> vector<8x8x32xf32>
    "tpu.trace_stop"() : () -> ()
    %72 = vector.shape_cast %71 : vector<8x8x32xf32> to vector<4x16x32xf32>
    %73 = arith.truncf %72 : vector<4x16x32xf32> to vector<4x16x32xbf16>
    %c0_24 = arith.constant 0 : index
    %c0_25 = arith.constant 0 : index
    %c0_26 = arith.constant 0 : index
    %74 = vector.load %arg7[%c0_24, %c0_25, %c0_26] : memref<4x32x128xbf16, #tpu.memory_space<vmem>>, vector<4x32x128xbf16>
    "tpu.trace_start"() <{level = 10 : i32, message = "hrd,hdc->hrc"}> : () -> ()
    %cst_27 = arith.constant dense<0.000000e+00> : vector<4x16x128xf32>
    %75 = tpu.matmul %73, %74, %cst_27 {dimension_numbers = #tpu.dot_dimension_numbers<[2], [1], [1], [2], [0, 0, 0, 1, 1, 2], [0], [0]>} : vector<4x16x32xbf16>, vector<4x32x128xbf16>, vector<4x16x128xf32> -> vector<4x16x128xf32>
    "tpu.trace_stop"() : () -> ()
    %cst_28 = arith.constant dense<0.000000e+00> : vector<16x128xf32>
    %76 = vector.multi_reduction <add>, %75, %cst_28 [0] : vector<4x16x128xf32> to vector<16x128xf32>
    %c0_29 = arith.constant 0 : index
    %c0_30 = arith.constant 0 : index
    %77 = vector.load %arg8[%c0_29, %c0_30] : memref<16x128xf32, #tpu.memory_space<vmem>>, vector<16x128xf32>
    tpu.vector_store %arg8[%c0_29, %c0_30], %76 {strides = array<i32>} : memref<16x128xf32, #tpu.memory_space<vmem>>, vector<16x128xf32>,
    return
  }
  func.func @transform_0(%arg0: i32) -> (i32, i32) {
    %c0_i32 = arith.constant 0 : i32
    %c0_i32_0 = arith.constant 0 : i32
    return %arg0, %c0_i32 : i32, i32
  }
  func.func @transform_1(%arg0: i32) -> (i32, i32) {
    %c0_i32 = arith.constant 0 : i32
    %c0_i32_0 = arith.constant 0 : i32
    %c0_i32_1 = arith.constant 0 : i32
    return %c0_i32, %c0_i32_0 : i32, i32
  }
  func.func @transform_2(%arg0: i32) -> (i32, i32) {
    %c0_i32 = arith.constant 0 : i32
    %c0_i32_0 = arith.constant 0 : i32
    %c0_i32_1 = arith.constant 0 : i32
    return %c0_i32, %c0_i32_0 : i32, i32
  }
  func.func @transform_3(%arg0: i32) -> (i32, i32) {
    %c0_i32 = arith.constant 0 : i32
    %c0_i32_0 = arith.constant 0 : i32
    %c0_i32_1 = arith.constant 0 : i32
    return %c0_i32, %c0_i32_0 : i32, i32
  }
  func.func @transform_4(%arg0: i32) -> (i32, i32) {
    %c0_i32 = arith.constant 0 : i32
    %c0_i32_0 = arith.constant 0 : i32
    %c0_i32_1 = arith.constant 0 : i32
    return %c0_i32, %c0_i32_0 : i32, i32
  }
  func.func @transform_5(%arg0: i32) -> (i32, i32) {
    %c0_i32 = arith.constant 0 : i32
    %c0_i32_0 = arith.constant 0 : i32
    %c0_i32_1 = arith.constant 0 : i32
    return %c0_i32, %c0_i32_0 : i32, i32
  }
  func.func @transform_6(%arg0: i32) -> (i32, i32, i32) {
    %c0_i32 = arith.constant 0 : i32
    %c0_i32_0 = arith.constant 0 : i32
    %c0_i32_1 = arith.constant 0 : i32
    %c0_i32_2 = arith.constant 0 : i32
    return %c0_i32, %c0_i32_0, %c0_i32_1 : i32, i32, i32
  }
  func.func @transform_7(%arg0: i32) -> (i32, i32) {
    %c0_i32 = arith.constant 0 : i32
    %c0_i32_0 = arith.constant 0 : i32
    return %arg0, %c0_i32 : i32, i32
  }
}

</mosaic_0001>

<bundles_post_ra>
// kernel: tpu_custom_call.1
= control target key start
LH: loop header
LB: loop body
LE: loop exit
PB: predicated region body
PF: predicated region fallthrough
CT: control target
= control target key end

     0   :  { %s3217_s0 = inlined_call_operand.hbm [shape: bf16[64,128], index: 0, kind: input, shape index: {}]   ;;  %s3218_s1 = inlined_call_operand.vmem [shape: f32[1,128], index: 1, kind: input, shape index: {}]   ;;  %s3219_s2 = inlined_call_operand.vmem [shape: f32[1,128], index: 2, kind: input, shape index: {}]   ;;  %s3220_s3 = inlined_call_operand.hbm [shape: bf16[128,128], index: 3, kind: input, shape index: {}]   ;;  %s3221_s4 = inlined_call_operand.hbm [shape: bf16[128,128], index: 4, kind: input, shape index: {}]   ;;  %s3222_s5 = inlined_call_operand.hbm [shape: bf16[128,128], index: 5, kind: input, shape index: {}]   ;;  %s3223_s6 = inlined_call_operand.hbm [shape: bf16[4,32,128], index: 6, kind: input, shape index: {}]   ;;  %s3224_s7 = inlined_call_operand.hbm [shape: f32[64,128], index: 7, kind: output, shape index: {}]  }
   0x1   :  { %3231 = sst [smem:[#allocation16_spill]] %s3220_s3 }
   0x2   :  { %12 = vsyncpa [#allocation3], 0 }
   0x3   :  { %14 = vsyncpa [#allocation3 + $0x1], 0 }
   0x4   :  { %15 = vsyncpa [#allocation6], 0 }
   0x5   :  { %16 = vsyncpa [#allocation9], 0 }
   0x6   :  { %17 = vsyncpa [#allocation4], 0 }
   0x7   :  { %19 = vsyncpa [#allocation4 + $0x1], 0  ;;  %s2805_s24 = smov 0   ;;  %s2807_s25 = smov 0  }
   0x8   :  { %s2809_s26 = smov 0   ;;  %s2811_s27 = smov 0  }
   0x9 LB: > { %s2826_s28 = sadd.s32 4294967295, %s2748_s27   ;;  %s2009_s29 = sadd.s32 4294967294, %s2748_s27   ;;  %s2748_s27 = sphi %s2811_s27, %s3252_s27   ;;  %s2744_s26 = sphi %s2809_s26, %s3251_s26   ;;  %s2740_s25 = sphi %s2807_s25, %s3250_s25   ;;  %s2736_s24 = sphi %s2805_s24, %s3249_s24  }
   0xa   : > { %p45_p0 = scmp.ne.s32.totalorder %s2740_s25, %s2736_s24  ;;  %p3225_p1 = scmp.eq.s32.totalorder %s2826_s28, 0 }
   0xb   : > { %p195_p2 = scmp.eq.s32.totalorder %s2826_s28, 3  ;;  %p201_p3 = scmp.eq.s32.totalorder %s2009_s29, 3 }
   0xc   : > { %p2835_p4 = por %p3225_p1, %p45_p0  ;;  %p2010_p5 = scmp.ge.s32.totalorder %s2748_s27, 1 }
   0xd   : > { %p2840_p6 = por %p201_p3, %p45_p0  ;;  %p208_p7 = scmp.lt.s32.totalorder %s2748_s27, 5 }
   0xe   : > { %s3232_s30 = scalar_select %p2835_p4, 1, 0 }
   0xf   : > { %s3233_s8 = scalar_select %p2840_p6, 1, 0 }
  0x10   : > { %p2845_p8 = pnand %p2010_p5, %p208_p7  ;;  %s2750_s10 = smov [#allocation5]  }
  0x11   : > { %s226_s11 = sshll.u32 %s2750_s10, 4  ;;  %s2751_s13 = smov [#allocation8]   ;;  %s227_s11 = int_to_ptr.vmem [resolvable:$true] %s226_s11 }
  0x12   : > { %s3234_s9 = scalar_select %p2845_p8, 1, 0 }
  0x13   : > { %p2400_p9 = pneg %p2845_p8  ;;  %s252_s14 = sshll.u32 %s2751_s13, 4  ;;  %s253_s14 = int_to_ptr.vmem [resolvable:$true] %s252_s14 }
  0x14   : > { %s2752_s15 = smov [#allocation7]   ;;  %s2555_s17 = scalar_lea.vmem %s227_s11, 1024 }
  0x15   : > { %p2853_p10 = pnand %p2400_p9, %p3225_p1  ;;  %s239_s16 = sshll.u32 %s2752_s15, 4  ;;  %s240_s16 = int_to_ptr.vmem [resolvable:$true] %s239_s16 }
  0x16   : > { %p2556_p12 = scmp.ne.s32.totalorder %s227_s11, %s2555_s17  ;;  %p2563_p3 = scmp.lt.s32.totalorder %s227_s11, %s227_s11 }
  0x17   : > { %p2546_p11 = pneg %p2853_p10  ;;  %p2564_p5 = scmp.lt.s32.totalorder %s2555_s17, %s2555_s17 }
  0x19   : > { %p2558_p13 = pnand %p2556_p12, %p2546_p11  ;;  %p2565_p7 = por %p2564_p5, %p2563_p3 }
  0x1b   : > { %p2559_p0 = pneg %p2558_p13 }
  0x1d   : > { %p2566_p9 = pnand %p2565_p7, %p2559_p0 }
  0x1f   : > { %2569 = shalt.err (!%p2566_p9)
}
  0x20   : > { %s3226_s18 = smov 64   ;;  %s3227_s19 = smov 4  }
  0x21   : > { %s3236_s3 = sld [smem:[#allocation16_spill]]  ;;  %s2581_s22 = scalar_lea.vmem %s253_s14, 1024 }
  0x22   : > { %p2582_p12 = scmp.ne.s32.totalorder %s253_s14, %s2581_s22  ;;  %p2589_p0 = scmp.lt.s32.totalorder %s253_s14, %s253_s14 }
  0x23   : > { %p2590_p5 = scmp.lt.s32.totalorder %s2581_s22, %s2581_s22 }
  0x24   : > { %p2584_p13 = pnand %p2582_p12, %p2546_p11 }
  0x25   : > { %p2591_p7 = por %p2590_p5, %p2589_p0 }
  0x26   : > { %p2585_p3 = pneg %p2584_p13 }
  0x27   : > { %2403 = dma.hbm_to_vmem [thread:$0]  (!%p2853_p10), %s3236_s3, 1024, %s227_s11, [#allocation6], %s3226_s18, %s3226_s18, %s3227_s19  }
  0x28   : > { %p2592_p9 = pnand %p2591_p7, %p2585_p3 }
  0x2a   : > { %2595 = shalt.err (!%p2592_p9)
}
  0x2b   : > { %2409 = dma.hbm_to_vmem [thread:$0]  (!%p2853_p10), %s3222_s5, 1024, %s253_s14, [#allocation9], %s3226_s18, %s3226_s18, %s3227_s19  }
  0x2c   : > { %s2607_s10 = scalar_lea.vmem %s240_s16, 1024  ;;  %p2615_p0 = scmp.lt.s32.totalorder %s240_s16, %s240_s16 }
  0x2d   : > { %p2608_p1 = scmp.ne.s32.totalorder %s240_s16, %s2607_s10  ;;  %p2616_p3 = scmp.lt.s32.totalorder %s2607_s10, %s2607_s10 }
  0x2f   : > { %p2610_p12 = pnand %p2608_p1, %p2546_p11  ;;  %p2617_p5 = por %p2616_p3, %p2615_p0 }
  0x31   : > { %p2611_p13 = pneg %p2610_p12 }
  0x33   : > { %p2618_p7 = pnand %p2617_p5, %p2611_p13 }
  0x35   : > { %2621 = shalt.err (!%p2618_p7)
}
  0x36   : > { %2406 = dma.hbm_to_vmem [thread:$0]  (!%p2853_p10), %s3221_s4, 1024, %s240_s16, [#allocation6], %s3226_s18, %s3226_s18, %s3227_s19  }
  0x37   : > { %s2755_s14 = smov [#allocation10]  }
  0x38   : > { %s265_s15 = sshll.u32 %s2755_s14, 4  ;;  %s266_s15 = int_to_ptr.vmem [resolvable:$true] %s265_s15 }
  0x39   : > { %s2633_s17 = scalar_lea.vmem %s266_s15, 1024  ;;  %p2641_p13 = scmp.lt.s32.totalorder %s266_s15, %s266_s15 }
  0x3a   : > { %p2634_p1 = scmp.ne.s32.totalorder %s266_s15, %s2633_s17  ;;  %p2642_p0 = scmp.lt.s32.totalorder %s2633_s17, %s2633_s17 }
  0x3c   : > { %p2636_p9 = pnand %p2634_p1, %p2546_p11  ;;  %p2643_p3 = por %p2642_p0, %p2641_p13 }
  0x3e   : > { %p2637_p12 = pneg %p2636_p9 }
  0x40   : > { %p2644_p5 = pnand %p2643_p3, %p2637_p12 }
  0x42   : > { %2647 = shalt.err (!%p2644_p5)
}
  0x43   : > { %2412 = dma.hbm_to_vmem [thread:$0]  (!%p2853_p10), %s3223_s6, 1024, %s266_s15, [#allocation9], %s3226_s18, %s3226_s18, %s3227_s19  }
  0x44   : > { %s2904_s21 = sadd.s32 1, %s2748_s27   ;;  %s32_s12 = sadd.s32 1, %s2744_s26 }
  0x45   : > { %s29_s22 = ssub.s32 %s2748_s27, %s2904_s21  ;;  %p39_p11 = scmp.ne.s32.totalorder %s2744_s26, %s2740_s25 }
  0x46   : > { %p30_p7 = scmp.eq.s32.totalorder %s29_s22, 0  ;;  %p40_p1 = scmp.eq.s32.totalorder %s2748_s27, 0 }
  0x47   : > { %p2914_p9 = por %p195_p2, %p39_p11  ;;  %p2425_p12 = scmp.lt.s32.totalorder %s2748_s27, 4 }
  0x48   : > { %s2920_s29 = scalar_select %p30_p7, %s2744_s26, %s32_s12  }
  0x49   : > { %s3237_s23 = scalar_select %p2914_p9, 1, 0 }
  0x4a   : > { %p41_p13 = por %p40_p1, %p39_p11  ;;  %s279_s10 = sand.u32 1, %s2744_s26  }
  0x4b   : > { %s2016_s11 = sshll.u32 %s279_s10, 3  ;;  %s2109_s13 = sshll.u32 %s2748_s27, 7 }
  0x4c   : > { %s2927_s17 = scalar_lea.hbm %s3217_s0, %s2109_s13  ;;  %s283_s16 = scalar_lea.vmem [#allocation2], %s2016_s11 }
  0x4d   : > { %s290_s20 = sshll.u32 %s283_s16, 4  ;;  %p2931_p2 = pnand %p2425_p12, %p41_p13  ;;  %s2929_s20 = int_to_ptr.vmem [resolvable:$true] %s290_s20 }
  0x4e   : > { %s2935_s12 = scalar_lea.sflag [#allocation3], %s279_s10  ;;  %s2648_s18 = scalar_lea.hbm %s2927_s17, 128 }
  0x4f   : > { %p2649_p10 = scmp.ne.s32.totalorder %s2927_s17, %s2648_s18  ;;  %p2650_p0 = pneg %p2931_p2 }
  0x50   : > { %s2653_s11 = scalar_lea.hbm %s3217_s0, 512  ;;  %p2654_p11 = scmp.lt.s32.totalorder %s2927_s17, %s3217_s0 }
  0x51   : > { %p2651_p3 = pnand %p2650_p0, %p2649_p10  ;;  %p2655_p7 = scmp.lt.s32.totalorder %s2653_s11, %s2648_s18 }
  0x53   : > { %p2652_p5 = pneg %p2651_p3  ;;  %p2656_p1 = por %p2655_p7, %p2654_p11 }
  0x55   : > { %p2657_p12 = pnand %p2656_p1, %p2652_p5 }
  0x57   : > { %2660 = shalt.err (!%p2657_p12)
}
  0x58   : > { %s2661_s10 = scalar_lea.vmem %s2929_s20, 128  ;;  %s2756_s19 = smov [#allocation2]  }
  0x59   : > { %p2662_p13 = scmp.ne.s32.totalorder %s2929_s20, %s2661_s10  ;;  %s2666_s3 = sshll.u32 %s2756_s19, 4  ;;  %s2667_s3 = int_to_ptr.vmem [resolvable:$false] %s2666_s3 }
  0x5a   : > { %s2668_s13 = scalar_lea.vmem %s2667_s3, 256  ;;  %p2669_p3 = scmp.lt.s32.totalorder %s2929_s20, %s2667_s3 }
  0x5b   : > { %p2664_p6 = pnand %p2662_p13, %p2650_p0  ;;  %p2670_p9 = scmp.lt.s32.totalorder %s2668_s13, %s2661_s10 }
  0x5d   : > { %p2665_p10 = pneg %p2664_p6  ;;  %p2671_p4 = por %p2670_p9, %p2669_p3 }
  0x5f   : > { %p2672_p8 = pnand %p2671_p4, %p2665_p10 }
  0x61   : > { %2675 = shalt.err (!%p2672_p8)
}
  0x62   : > { %s3239_s18 = smov 4   ;;  %s3240_s14 = smov 64  }
  0x63   : > { %2416 = dma.hbm_to_vmem [thread:$0]  (!%p2931_p2), %s2927_s17, 128, %s2929_s20, %s2935_s12, %s3240_s14, %s3240_s14, %s3239_s18  }
  0x64   : > { %p3241_p6 = scmp.ne.s32.totalorder %s3234_s9, 0 }
  0x65   : > { %s2962_s19 = sand.u32 (!%p3241_p6), 1, %s2740_s25   ;;  %p3242_p4 = scmp.ne.s32.totalorder (!%p3241_p6), %s3232_s30, 0 }
  0x66   : > { %302 = sbr.rel (%p3241_p6) target bundleno = 1738 (0x6ca), region = 48  ;;  %s2020_s3 = sshll.u32 (!%p3241_p6), %s2962_s19, 3 }
  0x67   : > { %s305_s11 = scalar_lea.sflag (!%p3241_p6), [#allocation3], %s2962_s19  ;;  %s308_s15 = scalar_lea.vmem (!%p3241_p6), [#allocation2], %s2020_s3 }
  0x6b   : > { %2719 = dma.done.wait (%p3242_p4), %s305_s11, 128  }
  0x6c   : > { %2721 = vsyncadd (%p3242_p4), %s305_s11, 4294967168  ;;  %p3243_p8 = scmp.eq.s32.totalorder %s2826_s28, 0 }
  0x6e   : > { %2723 = dma.done.wait (%p3243_p8), [#allocation6], 2048   ;;  %p3244_p9 = pmov %p3243_p8 }
  0x6f   : > { %p3245_p2 = pmov %p3243_p8 }
  0x70   : > { %2725 = vsyncadd (%p3244_p9), [#allocation6], 4294965248 }
  0x71   : > { %2727 = dma.done.wait (%p3245_p2), [#allocation9], 2048   ;;  %p3246_p0 = pmov %p3245_p2 }
  0x72   : > { %v2118_v0 = vld [vmem:[%s308_s15] sm:$0xff]   ;;  %v2757_v5 = vmov 0.0   ;;  %v370_v6 = vlaneseq  ;;  %v2480_v20 = vld [vmem:[#allocation5 + $0x28] sm:$0xff]   ;;  %v2482_v22 = vld [vmem:[#allocation5 + $0x20] sm:$0xff]   ;;  %vm2758_vm1 = vmmov 0   ;;  %vm797_vm2 = vcmask 261120  }
  0x73   : > { %2729 = vsyncadd (%p3246_p0), [#allocation9], 4294965248  ;;  %v2119_v1 = vunpack.c.l.bf16 %v2118_v0  ;;  %v2120_v2 = vunpack.c.h.bf16 %v2118_v0  ;;  %v2476_v3 = vld [vmem:[#allocation5 + $0x38] sm:$0xff]   ;;  %2192 = vmatprep.subr.bf16.mxu0 %v2757_v5  ;;  %2212 = vmatprep.subr.bf16.mxu1 %v2757_v5  ;;  %v2478_v18 = vld [vmem:[#allocation5 + $0x30] sm:$0xff]   ;;  %s2759_s22 = smov 96   ;;  %s2760_s12 = smov 32  }
  0x74   : > { %v2477_v4 = vld [vmem:[#allocation7 + $0x38] sm:$0xff]   ;;  %2193 = vmatpush3.bf16.msra.mxu0 %v2476_v3  ;;  %v371_v7 = vand.u32 127, %v370_v6  ;;  %v2479_v19 = vld [vmem:[#allocation7 + $0x30] sm:$0xff]   ;;  %v2481_v21 = vld [vmem:[#allocation7 + $0x28] sm:$0xff]   ;;  %2208 = vmatprep.mubr.msk.bf16.mxu0 %vm2758_vm1, %v2757_v5  ;;  %s2761_s16 = smov 64   ;;  %vm1266_vm3 = vcmask 1043456  }
  0x75   : > { %362 = vadd.xlane.f32.xlu0 %v2119_v1  ;;  %2213 = vmatpush3.bf16.msra.mxu1 %v2477_v4  ;;  %v2483_v23 = vld [vmem:[#allocation7 + $0x20] sm:$0xff]   ;;  %v2484_v24 = vld [vmem:[#allocation5 + $0x18] sm:$0xff]   ;;  %v2486_v26 = vld [vmem:[#allocation5 + $0x10] sm:$0xff]   ;;  %vm1166_vm4 = vcmask 64512   ;;  %s2025_s10 = sshll.u32 %s2962_s19, 4  ;;  %s2116_s14 = sshll.u32 %s2826_s28, 8 }
  0x76   : > { %2194 = vmatprep.subr.bf16.mxu0 %v2757_v5  ;;  %2214 = vmatprep.subr.bf16.mxu1 %v2757_v5  ;;  %vm372_vm0 = vcmp.lt.s32.totalorder %v371_v7, 64  ;;  %v2485_v25 = vld [vmem:[#allocation7 + $0x18] sm:$0xff]   ;;  %v2487_v27 = vld [vmem:[#allocation7 + $0x10] sm:$0xff]   ;;  %v2488_v28 = vld [vmem:[#allocation5 + $0x8] sm:$0xff]   ;;  %s354_s13 = scalar_lea.vmem [#allocation11], %s2025_s10  ;;  %s3175_s15 = scalar_lea.hbm %s3224_s7, %s2116_s14 }
  0x77   : > { %2228 = vmatprep.mubr.msk.bf16.mxu1 %vm2758_vm1, %v2757_v5  ;;  %v2489_v29 = vld [vmem:[#allocation7 + $0x8] sm:$0xff]   ;;  %v2490_v30 = vld [vmem:[#allocation5] sm:$0xff]   ;;  %v2026_v40 = vld [vmem:[%s3218_s1] ss:$0 sm:$0xff]  ;;  %s1898_s18 = sshll.u32 %s354_s13, 4  ;;  %s1885_s30 = scalar_lea.sflag [#allocation4], %s2962_s19  ;;  %s3170_s18 = int_to_ptr.vmem [resolvable:$true] %s1898_s18 }
  0x78   : > { %2195 = vmatpush3.bf16.msra.mxu0 %v2478_v18  ;;  %v2491_v31 = vld [vmem:[#allocation7] sm:$0xff]   ;;  %v2027_v44 = vld [vmem:[%s3219_s2] ss:$0 sm:$0xff]  ;;  %v2492_v48 = vld [vmem:[#allocation8 + $0x38] sm:$0xff]   ;;  %s2676_s9 = scalar_lea.vmem %s3170_s18, 256  ;;  %p3247_p11 = scmp.ne.s32.totalorder %s3237_s23, 0 }
  0x79   : > { %364 = vadd.xlane.f32.xlu0 %v2120_v2  ;;  %2215 = vmatpush3.bf16.msra.mxu1 %v2479_v19  ;;  %v2493_v50 = vld [vmem:[#allocation8 + $0x30] sm:$0xff]   ;;  %v2494_v51 = vld [vmem:[#allocation8 + $0x28] sm:$0xff]   ;;  %v2495_v52 = vld [vmem:[#allocation8 + $0x20] sm:$0xff]   ;;  %p2677_p5 = scmp.ne.s32.totalorder %s3170_s18, %s2676_s9  ;;  %s2762_s28 = smov [#allocation11]  }
  0x7a   : > { %2196 = vmatprep.subr.bf16.mxu0 %v2757_v5  ;;  %2216 = vmatprep.subr.bf16.mxu1 %v2757_v5  ;;  %v2496_v53 = vld [vmem:[#allocation8 + $0x18] sm:$0xff]   ;;  %v2497_v54 = vld [vmem:[#allocation8 + $0x10] sm:$0xff]   ;;  %v2498_v55 = vld [vmem:[#allocation8 + $0x8] sm:$0xff]   ;;  %s2680_s17 = sshll.u32 %s2762_s28, 4  ;;  %s2681_s17 = int_to_ptr.vmem [resolvable:$false] %s2680_s17 }
  0x7b   : > { %v2499_v56 = vld [vmem:[#allocation8] sm:$0xff]   ;;  %p2678_p7 = pnand %p2677_p5, %p3247_p11  ;;  %s2682_s20 = scalar_lea.vmem %s2681_s17, 512 }
  0x7c   : > { %2197 = vmatpush3.bf16.msra.mxu0 %v2480_v20  ;;  %p2683_p12 = scmp.lt.s32.totalorder %s3170_s18, %s2681_s17  ;;  %p2684_p13 = scmp.lt.s32.totalorder %s2682_s20, %s2676_s9 }
  0x7d   : > { %2217 = vmatpush3.bf16.msra.mxu1 %v2481_v21  ;;  %2198 = vmatprep.subr.bf16.mxu0 %v2757_v5  ;;  %p2679_p1 = pneg %p2678_p7 }
  0x7e   : > { %2218 = vmatprep.subr.bf16.mxu1 %v2757_v5  ;;  %p2685_p10 = por %p2684_p13, %p2683_p12 }
  0x80   : > { %2199 = vmatpush3.bf16.msra.mxu0 %v2482_v22  ;;  %p2686_p3 = pnand %p2685_p10, %p2679_p1 }
  0x81   : > { %2219 = vmatpush3.bf16.msra.mxu1 %v2483_v23  ;;  %2200 = vmatprep.subr.bf16.mxu0 %v2757_v5 }
  0x82   : > { %2220 = vmatprep.subr.bf16.mxu1 %v2757_v5 }
  0x84   : > { %2201 = vmatpush3.bf16.msra.mxu0 %v2484_v24 }
  0x85   : > { %2221 = vmatpush3.bf16.msra.mxu1 %v2485_v25  ;;  %2202 = vmatprep.subr.bf16.mxu0 %v2757_v5 }
  0x86   : > { %2222 = vmatprep.subr.bf16.mxu1 %v2757_v5 }
  0x88   : > { %2203 = vmatpush3.bf16.msra.mxu0 %v2486_v26 }
  0x89   : > { %2223 = vmatpush3.bf16.msra.mxu1 %v2487_v27  ;;  %2204 = vmatprep.subr.bf16.mxu0 %v2757_v5 }
  0x8a   : > { %2224 = vmatprep.subr.bf16.mxu1 %v2757_v5 }
  0x8c   : > { %2205 = vmatpush3.bf16.msra.mxu0 %v2488_v28 }
  0x8d   : > { %2225 = vmatpush3.bf16.msra.mxu1 %v2489_v29  ;;  %2206 = vmatprep.subr.bf16.mxu0 %v2757_v5 }
  0x8e   : > { %2226 = vmatprep.subr.bf16.mxu1 %v2757_v5 }
  0x90   : > { %2207 = vmatpush3.bf16.msra.mxu0 %v2490_v30 }
  0x91   : > { %2227 = vmatpush3.bf16.msra.mxu1 %v2491_v31  ;;  %2232 = vmatprep.subr.bf16.mxu0 %v2757_v5 }
  0x92   : > { %2252 = vmatprep.subr.bf16.mxu1 %v2757_v5 }
  0xfe   : > { %v363_v8 = vpop.xlane.xlu0 %362 }
  0xff   : > { %v366_v9 = vmul.f32 0.015625, %v363_v8 }
 0x101   : > { %v368_v10 = vsub.f32 %v2119_v1, %v366_v9 }
 0x102   : > { %v365_v11 = vpop.xlane.xlu0 %364 }
 0x103   : > { %v367_v12 = vmul.f32 0.015625, %v365_v11  ;;  %v373_v13 = vsel %vm372_vm0, %v368_v10, 0.0 }
 0x104   : > { %v375_v14 = vmul.f32 %v373_v13, %v373_v13 }
 0x105   : > { %v369_v15 = vsub.f32 %v2120_v2, %v367_v12 }
 0x106   : > { %377 = vadd.xlane.f32.xlu1 %v375_v14 }
 0x107   : > { %v374_v16 = vsel %vm372_vm0, %v369_v15, 0.0 }
 0x108   : > { %v376_v17 = vmul.f32 %v374_v16, %v374_v16 }
 0x10a   : > { %379 = vadd.xlane.f32.xlu1 %v376_v17 }
 0x18f   : > { %v378_v32 = vpop.xlane.xlu1 %377 }
 0x190   : > { %v381_v33 = vmul.f32 0.015625, %v378_v32 }
 0x192   : > { %v383_v34 = vadd.f32 1e-05, %v381_v33 }
 0x193   : > { %v380_v35 = vpop.xlane.xlu1 %379 }
 0x194   : > { %2508 = vrsqrt.f32 %v383_v34  ;;  %v382_v36 = vmul.f32 0.015625, %v380_v35 }
 0x196   : > { %v384_v37 = vadd.f32 1e-05, %v382_v36 }
 0x198   : > { %2510 = vrsqrt.f32 %v384_v37 }
 0x1a1   : > { %v2509_v38 = vpop.eup %2508 }
 0x1a2   : > { %v387_v39 = vmul.f32 %v2509_v38, %v373_v13 }
 0x1a4   : > { %v396_v43 = vmul.f32 %v2026_v40, %v387_v39 }
 0x1a5   : > { %v2511_v41 = vpop.eup %2510 }
 0x1a6   : > { %v388_v42 = vmul.f32 %v2511_v41, %v374_v16  ;;  %v405_v46 = vadd.f32 %v2027_v44, %v396_v43 }
 0x1a8   : > { %v397_v45 = vmul.f32 %v2026_v40, %v388_v42 }
 0x1aa   : > { %v406_v47 = vadd.f32 %v2027_v44, %v397_v45 }
 0x1ac   : > { %v407_v49 = vpack.c.bf16 %v406_v47, %v405_v46 }
 0x1ae   : > { %2209 = vmatmul.mubr.bf16.vlgmr.msra.gmra.mxu0 %v407_v49  ;;  %2229 = vmatmul.mubr.bf16.vlgmr.msra.gmra.mxu1 %v407_v49 }
 0x1af   : > { %2233 = vmatpush3.bf16.msra.mxu0 %v2492_v48  ;;  %2248 = vmatprep.mubr.msk.bf16.mxu0 %vm2758_vm1, %v2757_v5 }
 0x1b0   : > { %2234 = vmatprep.subr.bf16.mxu0 %v2757_v5  ;;  %2254 = vmatprep.mubr.msk.bf16.mxu1 %vm2758_vm1, %v2757_v5 }
 0x1b3   : > { %2235 = vmatpush3.bf16.msra.mxu0 %v2493_v50 }
 0x1b4   : > { %2236 = vmatprep.subr.bf16.mxu0 %v2757_v5 }
 0x1b7   : > { %2237 = vmatpush3.bf16.msra.mxu0 %v2494_v51 }
 0x1b8   : > { %2238 = vmatprep.subr.bf16.mxu0 %v2757_v5 }
 0x1bb   : > { %2239 = vmatpush3.bf16.msra.mxu0 %v2495_v52 }
 0x1bc   : > { %2240 = vmatprep.subr.bf16.mxu0 %v2757_v5 }
 0x1bf   : > { %2241 = vmatpush3.bf16.msra.mxu0 %v2496_v53 }
 0x1c0   : > { %2242 = vmatprep.subr.bf16.mxu0 %v2757_v5 }
 0x1c3   : > { %2243 = vmatpush3.bf16.msra.mxu0 %v2497_v54 }
 0x1c4   : > { %2244 = vmatprep.subr.bf16.mxu0 %v2757_v5 }
 0x1c7   : > { %2245 = vmatpush3.bf16.msra.mxu0 %v2498_v55 }
 0x1c8   : > { %2246 = vmatprep.subr.bf16.mxu0 %v2757_v5 }
 0x1cb   : > { %2247 = vmatpush3.bf16.msra.mxu0 %v2499_v56 }
 0x1cc   : > { %2276 = vmatprep.subr.bf16.mxu0 %v2757_v5 }
 0x1ce   : > { %2249 = vmatmul.mubr.bf16.vlgmr.msra.gmra.mxu0 %v407_v49 }
 0x1cf   : > { %2278 = vmatprep.mubr.msk.bf16.mxu0 %vm2758_vm1, %v2757_v5 }
 0x26e   : > { %v506_v57 = vpop.f32.mrf.mxu0  ;;  %v614_v58 = vpop.f32.mrf.mxu1 }
 0x26f   : > { %v2112_v59 = vpack.c.bf16 %v614_v58, %v614_v58  ;;  %v513_v1 = vmul.f32 0.17677669, %v506_v57 }
 0x270   : > { %v2210_v60 = vpop.f32.mrf.mxu0  ;;  %v2230_v61 = vpop.f32.mrf.mxu1 }
 0x271   : > { %v802_v62 = vsel %vm797_vm2, %v2112_v59, 0  ;;  %v2110_v9 = vpack.c.bf16 %v513_v1, %v513_v1 }
 0x272   : > { %v509_v63 = vpop.f32.mrf.mxu0  ;;  %v617_v0 = vpop.f32.mrf.mxu1  ;;  %2253 = vmatpush3.bf16.xpose.msra.mxu1 %v802_v62 }
 0x273   : > { %v514_v2 = vmul.f32 0.17677669, %v509_v63  ;;  %v621_v3 = vpack.c.bf16 %v617_v0, %v614_v58  ;;  %2258 = vmatprep.subr.bf16.mxu1 %v2757_v5  ;;  %v2113_v8 = vpack.c.bf16 %v617_v0, %v617_v0 }
 0x274   : > { %v2211_v4 = vpop.f32.mrf.mxu0  ;;  %v2231_v6 = vpop.f32.mrf.mxu1 }
 0x275   : > { %v515_v7 = vpack.c.bf16 %v514_v2, %v513_v1  ;;  %752 = vrot.lane.b32.xlu0 %v621_v3, %s2759_s22  ;;  %v848_v10 = vsel %vm797_vm2, %v2113_v8, 0  ;;  %v2111_v11 = vpack.c.bf16 %v514_v2, %v514_v2 }
 0x277   : > { %729 = vrot.lane.b32.xlu1 %v515_v7, %s2759_s22 }
 0x279   : > { %756 = vrot.lane.b32.xlu0 %v621_v3, %s2760_s12  ;;  %2255 = vmatmul.mubr.msk.bf16.vlgmr.msra.gmra.mxu1 %vm797_vm2, %v2110_v9 }
 0x27a   : > { %2259 = vmatpush3.bf16.xpose.msra.mxu1 %v848_v10  ;;  %2260 = vmatprep.mubr.msk.bf16.mxu1 %vm2758_vm1, %v2757_v5 }
 0x27b   : > { %754 = vrot.lane.b32.xlu1 %v621_v3, %s2761_s16  ;;  %2264 = vmatprep.subr.bf16.mxu1 %v2757_v5 }
 0x27f   : > { %731 = vrot.lane.b32.xlu1 %v515_v7, %s2761_s16 }
 0x281   : > { %2261 = vmatmul.mubr.msk.bf16.vlgmr.msra.gmra.mxu1 %vm797_vm2, %v2111_v11 }
 0x282   : > { %2266 = vmatprep.mubr.msk.bf16.mxu1 %vm2758_vm1, %v2757_v5 }
 0x283   : > { %733 = vrot.lane.b32.xlu1 %v515_v7, %s2760_s12 }
 0x28e   : > { %v720_v12 = vpop.f32.mrf.mxu0 }
 0x28f   : > { %v2114_v36 = vpack.c.bf16 %v720_v12, %v720_v12 }
 0x290   : > { %v2250_v13 = vpop.f32.mrf.mxu0 }
 0x291   : > { %v1268_v40 = vsel %vm1266_vm3, %v2114_v36, 0 }
 0x292   : > { %v723_v14 = vpop.f32.mrf.mxu0 }
 0x293   : > { %v3036_v15 = vpack.c.bf16 %v723_v14, %v720_v12  ;;  %v2115_v42 = vpack.c.bf16 %v723_v14, %v723_v14 }
 0x294   : > { %v2251_v16 = vpop.f32.mrf.mxu0 }
 0x295   : > { %v1314_v44 = vsel %vm1266_vm3, %v2115_v42, 0 }
 0x2e7   : > { %v753_v17 = vpop.permute.xlu0 %752 }
 0x2e8   : > { %v2062_v18 = vcombine.low %v753_v17, %v753_v17  ;;  %v2063_v22 = vcombine.high %v753_v17, %v753_v17 }
 0x2e9   : > { %v730_v19 = vpop.permute.xlu1 %729 }
 0x2ea   : > { %v894_v20 = vsel %vm797_vm2, %v2062_v18, 0  ;;  %v2054_v24 = vcombine.low %v730_v19, %v730_v19  ;;  %v940_v27 = vsel %vm797_vm2, %v2063_v22, 0  ;;  %v2055_v32 = vcombine.high %v730_v19, %v730_v19 }
 0x2eb   : > { %2265 = vmatpush3.bf16.xpose.msra.mxu1 %v894_v20  ;;  %v757_v26 = vpop.permute.xlu0 %756 }
 0x2ec   : > { %2270 = vmatprep.subr.bf16.mxu1 %v2757_v5  ;;  %v2066_v29 = vcombine.low %v757_v26, %v757_v26  ;;  %v2067_v37 = vcombine.high %v757_v26, %v757_v26 }
 0x2ed   : > { %v755_v21 = vpop.permute.xlu1 %754 }
 0x2ee   : > { %v2064_v23 = vcombine.low %v755_v21, %v755_v21  ;;  %v2065_v30 = vcombine.high %v755_v21, %v755_v21  ;;  %v1078_v33 = vsel %vm797_vm2, %v2066_v29, 0  ;;  %v1124_v41 = vsel %vm797_vm2, %v2067_v37, 0 }
 0x2f0   : > { %v986_v25 = vsel %vm797_vm2, %v2064_v23, 0  ;;  %v1032_v34 = vsel %vm797_vm2, %v2065_v30, 0 }
 0x2f1   : > { %2277 = vmatpush3.bf16.xpose.msra.mxu0 %v986_v25  ;;  %v732_v28 = vpop.permute.xlu1 %731 }
 0x2f2   : > { %2267 = vmatmul.mubr.msk.bf16.vlgmr.msra.gmra.mxu1 %vm797_vm2, %v2054_v24  ;;  %2288 = vmatprep.subr.bf16.mxu0 %v2757_v5  ;;  %v2056_v31 = vcombine.low %v732_v28, %v732_v28  ;;  %v2057_v39 = vcombine.high %v732_v28, %v732_v28 }
 0x2f3   : > { %2271 = vmatpush3.bf16.xpose.msra.mxu1 %v940_v27  ;;  %2272 = vmatprep.mubr.msk.bf16.mxu1 %vm2758_vm1, %v2757_v5 }
 0x2f4   : > { %2282 = vmatprep.subr.bf16.mxu1 %v2757_v5 }
 0x2f5   : > { %v734_v35 = vpop.permute.xlu1 %733 }
 0x2f6   : > { %v2058_v38 = vcombine.low %v734_v35, %v734_v35  ;;  %v2059_v43 = vcombine.high %v734_v35, %v734_v35 }
 0x2f8   : > { %2279 = vmatmul.mubr.msk.bf16.vlgmr.msra.gmra.mxu0 %vm797_vm2, %v2056_v31 }
 0x2f9   : > { %2289 = vmatpush3.bf16.xpose.msra.mxu0 %v1078_v33  ;;  %2290 = vmatprep.mubr.msk.bf16.mxu0 %vm2758_vm1, %v2757_v5 }
 0x2fa   : > { %2273 = vmatmul.mubr.msk.bf16.vlgmr.msra.gmra.mxu1 %vm797_vm2, %v2055_v32  ;;  %2300 = vmatprep.subr.bf16.mxu0 %v2757_v5 }
 0x2fb   : > { %2283 = vmatpush3.bf16.xpose.msra.mxu1 %v1032_v34  ;;  %2284 = vmatprep.mubr.msk.bf16.mxu1 %vm2758_vm1, %v2757_v5 }
 0x2fc   : > { %2294 = vmatprep.subr.bf16.mxu1 %v2757_v5 }
 0x300   : > { %2291 = vmatmul.mubr.msk.bf16.vlgmr.msra.gmra.mxu0 %vm797_vm2, %v2058_v38 }
 0x301   : > { %2301 = vmatpush3.bf16.msra.mxu0 %v1268_v40  ;;  %2302 = vmatprep.mubr.msk.bf16.mxu0 %vm2758_vm1, %v2757_v5 }
 0x302   : > { %2285 = vmatmul.mubr.msk.bf16.vlgmr.msra.gmra.mxu1 %vm797_vm2, %v2057_v39  ;;  %2312 = vmatprep.subr.bf16.mxu0 %v2757_v5 }
 0x303   : > { %2295 = vmatpush3.bf16.xpose.msra.mxu1 %v1124_v41  ;;  %2296 = vmatprep.mubr.msk.bf16.mxu1 %vm2758_vm1, %v2757_v5 }
 0x304   : > { %2306 = vmatprep.subr.bf16.mxu1 %v2757_v5 }
 0x30a   : > { %2297 = vmatmul.mubr.msk.bf16.vlgmr.msra.gmra.mxu1 %vm797_vm2, %v2059_v43 }
 0x30b   : > { %2307 = vmatpush3.bf16.msra.mxu1 %v1314_v44  ;;  %2308 = vmatprep.mubr.msk.bf16.mxu1 %vm2758_vm1, %v2757_v5 }
 0x30c   : > { %2318 = vmatprep.subr.bf16.mxu1 %v2757_v5 }
 0x339   : > { %v838_v45 = vpop.f32.mrf.mxu1 }
 0x33a   : > { %v1167_v46 = vsel %vm1166_vm4, %v838_v45, -inf }
 0x33b   : > { %1168 = vmax.xlane.f32.xlu0 %v1167_v46  ;;  %v2256_v47 = vpop.f32.mrf.mxu1 }
 0x33d   : > { %v841_v48 = vpop.f32.mrf.mxu1 }
 0x33f   : > { %v2257_v49 = vpop.f32.mrf.mxu1 }
 0x341   : > { %v884_v50 = vpop.f32.mrf.mxu1 }
 0x342   : > { %v1170_v51 = vsel %vm1166_vm4, %v884_v50, -inf }
 0x343   : > { %v2262_v52 = vpop.f32.mrf.mxu1  ;;  %1171 = vmax.xlane.f32.xlu1 %v1170_v51 }
 0x345   : > { %v887_v53 = vpop.f32.mrf.mxu1 }
 0x347   : > { %v2263_v54 = vpop.f32.mrf.mxu1 }
 0x3b2   : > { %v930_v55 = vpop.f32.mrf.mxu1 }
 0x3b3   : > { %v1173_v56 = vsel %vm1166_vm4, %v930_v55, -inf }
 0x3b4   : > { %1174 = vmax.xlane.f32.xlu0 %v1173_v56  ;;  %v2268_v57 = vpop.f32.mrf.mxu1 }
 0x3b6   : > { %v933_v58 = vpop.f32.mrf.mxu1 }
 0x3b8   : > { %v2269_v59 = vpop.f32.mrf.mxu1  ;;  %v1022_v60 = vpop.f32.mrf.mxu0 }
 0x3b9   : > { %v1179_v4 = vsel %vm1166_vm4, %v1022_v60, -inf }
 0x3ba   : > { %v976_v61 = vpop.f32.mrf.mxu1  ;;  %v2280_v62 = vpop.f32.mrf.mxu0 }
 0x3bb   : > { %v1176_v63 = vsel %vm1166_vm4, %v976_v61, -inf }
 0x3bc   : > { %1177 = vmax.xlane.f32.xlu0 %v1176_v63  ;;  %v2274_v0 = vpop.f32.mrf.mxu1  ;;  %v1025_v1 = vpop.f32.mrf.mxu0 }
 0x3be   : > { %v979_v2 = vpop.f32.mrf.mxu1  ;;  %v2281_v3 = vpop.f32.mrf.mxu0 }
 0x3c0   : > { %v2275_v6 = vpop.f32.mrf.mxu1  ;;  %1180 = vmax.xlane.f32.xlu0 %v1179_v4  ;;  %v1114_v7 = vpop.f32.mrf.mxu0 }
 0x3c1   : > { %v1185_v11 = vsel %vm1166_vm4, %v1114_v7, -inf }
 0x3c2   : > { %v3077_v8 = vpop.f32.mrf.mxu1  ;;  %v2292_v9 = vpop.f32.mrf.mxu0 }
 0x3c3   : > { %v1182_v10 = vsel %vm1166_vm4, %v3077_v8, -inf }
 0x3c4   : > { %v1169_v12 = vpop.xlane.xlu0 %1168  ;;  %1183 = vmax.xlane.f32.xlu1 %v1182_v10  ;;  %v2286_v13 = vpop.f32.mrf.mxu1  ;;  %1186 = vmax.xlane.f32.xlu0 %v1185_v11 }
 0x3c5   : > { %v1191_v14 = vsub.f32 %v838_v45, %v1169_v12  ;;  %v1117_v16 = vpop.f32.mrf.mxu0 }
 0x3c6   : > { %v1071_v17 = vpop.f32.mrf.mxu1 }
 0x3c7   : > { %v1199_v18 = vmul.f32 1.442695, %v1191_v14  ;;  %v2293_v19 = vpop.f32.mrf.mxu0 }
 0x3c8   : > { %v2287_v20 = vpop.f32.mrf.mxu1 }
 0x3c9   : > { %2512 = vpow2.f32 %v1199_v18 }
 0x3ca   : > { %v3082_v21 = vpop.f32.mrf.mxu1 }
 0x3cb   : > { %v1188_v22 = vsel %vm1166_vm4, %v3082_v21, -inf }
 0x3cc   : > { %1189 = vmax.xlane.f32.xlu1 %v1188_v22  ;;  %v2298_v23 = vpop.f32.mrf.mxu1  ;;  %v1172_v24 = vpop.xlane.xlu1 %1171 }
 0x3cd   : > { %v1192_v25 = vsub.f32 %v884_v50, %v1172_v24 }
 0x3ce   : > { %v1163_v26 = vpop.f32.mrf.mxu1 }
 0x3cf   : > { %v1201_v27 = vmul.f32 1.442695, %v1192_v25 }
 0x3d0   : > { %v2299_v28 = vpop.f32.mrf.mxu1 }
 0x3d1   : > { %2514 = vpow2.f32 %v1201_v27 }
 0x3d6   : > { %v2513_v29 = vpop.eup %2512 }
 0x3d7   : > { %v1215_v30 = vsel %vm1166_vm4, %v2513_v29, 0.0 }
 0x3d8   : > { %1216 = vadd.xlane.f32.xlu0 %v1215_v30 }
 0x3de   : > { %v2515_v31 = vpop.eup %2514 }
 0x3df   : > { %v1218_v32 = vsel %vm1166_vm4, %v2515_v31, 0.0 }
 0x3e0   : > { %1219 = vadd.xlane.f32.xlu1 %v1218_v32 }
 0x43d   : > { %v1175_v33 = vpop.xlane.xlu0 %1174 }
 0x43e   : > { %v1193_v34 = vsub.f32 %v930_v55, %v1175_v33 }
 0x440   : > { %v1203_v35 = vmul.f32 1.442695, %v1193_v34 }
 0x442   : > { %2516 = vpow2.f32 %v1203_v35 }
 0x445   : > { %v1178_v36 = vpop.xlane.xlu0 %1177 }
 0x446   : > { %v1194_v37 = vsub.f32 %v976_v61, %v1178_v36 }
 0x448   : > { %v1205_v38 = vmul.f32 1.442695, %v1194_v37 }
 0x449   : > { %v1181_v39 = vpop.xlane.xlu0 %1180 }
 0x44a   : > { %2518 = vpow2.f32 %v1205_v38  ;;  %v1195_v40 = vsub.f32 %v1022_v60, %v1181_v39  ;;  %v2500_v38 = vld [vmem:[#allocation10 + $0x8] sm:$0xff]  }
 0x44c   : > { %v1207_v41 = vmul.f32 1.442695, %v1195_v40 }
 0x44d   : > { %v1187_v42 = vpop.xlane.xlu0 %1186  ;;  %v1184_v52 = vpop.xlane.xlu1 %1183 }
 0x44e   : > { %2520 = vpow2.f32 %v1207_v41  ;;  %v1197_v43 = vsub.f32 %v1114_v7, %v1187_v42  ;;  %v1196_v60 = vsub.f32 %v3077_v8, %v1184_v52 }
 0x44f   : > { %v2517_v44 = vpop.eup %2516 }
 0x450   : > { %v1211_v45 = vmul.f32 1.442695, %v1197_v43  ;;  %v1221_v46 = vsel %vm1166_vm4, %v2517_v44, 0.0  ;;  %v1209_v63 = vmul.f32 1.442695, %v1196_v60  ;;  %v2504_v60 = vld [vmem:[#allocation10 + $0x28] sm:$0xff]  }
 0x451   : > { %1222 = vadd.xlane.f32.xlu0 %v1221_v46 }
 0x452   : > { %2522 = vpow2.f32 %v1211_v45 }
 0x455   : > { %v1190_v55 = vpop.xlane.xlu1 %1189 }
 0x456   : > { %v1198_v0 = vsub.f32 %v3082_v21, %v1190_v55 }
 0x457   : > { %v2519_v47 = vpop.eup %2518 }
 0x458   : > { %v1224_v48 = vsel %vm1166_vm4, %v2519_v47, 0.0  ;;  %v1213_v2 = vmul.f32 1.442695, %v1198_v0  ;;  %v2506_v0 = vld [vmem:[#allocation10 + $0x38] sm:$0xff]  }
 0x459   : > { %1225 = vadd.xlane.f32.xlu1 %v1224_v48  ;;  %v2502_v48 = vld [vmem:[#allocation10 + $0x18] sm:$0xff]  }
 0x45b   : > { %v3090_v49 = vpop.eup %2520 }
 0x45c   : > { %v1227_v50 = vsel %vm1166_vm4, %v3090_v49, 0.0 }
 0x45d   : > { %1228 = vadd.xlane.f32.xlu0 %v1227_v50 }
 0x45f   : > { %v3094_v51 = vpop.eup %2522 }
 0x460   : > { %v1233_v53 = vsel %vm1166_vm4, %v3094_v51, 0.0 }
 0x461   : > { %v1217_v54 = vpop.xlane.xlu0 %1216  ;;  %1234 = vadd.xlane.f32.xlu0 %v1233_v53 }
 0x462   : > { %2524 = vrcp.f32 %v1217_v54 }
 0x469   : > { %v1220_v56 = vpop.xlane.xlu1 %1219 }
 0x46a   : > { %2526 = vrcp.f32 %v1220_v56  ;;  %777 = vrot.lane.b32.xlu1 %v3036_v15, %s2761_s16 }
 0x46b   : > { %2528 = vpow2.f32 %v1209_v63 }
 0x46c   : > { %2530 = vpow2.f32 %v1213_v2 }
 0x46f   : > { %v2525_v57 = vpop.eup %2524 }
 0x470   : > { %v1247_v58 = vmul.f32 %v2525_v57, %v2513_v29 }
 0x472   : > { %v1255_v59 = vpack.c.bf16 %v1247_v58, %v1247_v58 }
 0x474   : > { %2303 = vmatmul.mubr.msk.bf16.vlgmr.msra.gmra.mxu0 %vm1166_vm4, %v1255_v59 }
 0x475   : > { %2314 = vmatprep.mubr.msk.bf16.mxu0 %vm2758_vm1, %v2757_v5 }
 0x477   : > { %v2527_v61 = vpop.eup %2526  ;;  %775 = vrot.lane.b32.xlu0 %v3036_v15, %s2759_s22 }
 0x478   : > { %v1248_v62 = vmul.f32 %v2527_v61, %v2515_v31  ;;  %v3110_v3 = vpop.eup %2528  ;;  %v2505_v61 = vld [vmem:[#allocation10 + $0x20] sm:$0xff]  }
 0x479   : > { %v1230_v4 = vsel %vm1166_vm4, %v3110_v3, 0.0  ;;  %v3114_v6 = vpop.eup %2530 }
 0x47a   : > { %v1256_v1 = vpack.c.bf16 %v1248_v62, %v1248_v62  ;;  %v1236_v7 = vsel %vm1166_vm4, %v3114_v6, 0.0 }
 0x47c   : > { %2309 = vmatmul.mubr.msk.bf16.vlgmr.msra.gmra.mxu1 %vm1166_vm4, %v1256_v1 }
 0x47d   : > { %2320 = vmatprep.mubr.msk.bf16.mxu1 %vm2758_vm1, %v2757_v5 }
 0x48e   : > { %1231 = vadd.xlane.f32.xlu1 %v1230_v4 }
 0x492   : > { %1237 = vadd.xlane.f32.xlu1 %v1236_v7  ;;  %v2507_v7 = vld [vmem:[#allocation10 + $0x30] sm:$0xff]  }
 0x4a3   : > { %779 = vrot.lane.b32.xlu1 %v3036_v15, %s2760_s12 }
 0x4da   : > { %v1223_v8 = vpop.xlane.xlu0 %1222 }
 0x4db   : > { %2532 = vrcp.f32 %v1223_v8 }
 0x4e2   : > { %v1226_v9 = vpop.xlane.xlu1 %1225 }
 0x4e3   : > { %2534 = vrcp.f32 %v1226_v9 }
 0x4e6   : > { %v1229_v10 = vpop.xlane.xlu0 %1228  ;;  %v778_v13 = vpop.permute.xlu1 %777 }
 0x4e7   : > { %2536 = vrcp.f32 %v1229_v10  ;;  %v2072_v21 = vcombine.low %v778_v13, %v778_v13  ;;  %v2073_v22 = vcombine.high %v778_v13, %v778_v13 }
 0x4e8   : > { %v2533_v12 = vpop.eup %2532 }
 0x4e9   : > { %v1249_v19 = vmul.f32 %v2533_v12, %v2517_v44  ;;  %v1452_v27 = vsel %vm1266_vm3, %v2072_v21, 0  ;;  %v1498_v28 = vsel %vm1266_vm3, %v2073_v22, 0  ;;  %v2501_v44 = vld [vmem:[#allocation10] sm:$0xff]  }
 0x4ea   : > { %v1235_v11 = vpop.xlane.xlu0 %1234 }
 0x4eb   : > { %v1257_v25 = vpack.c.bf16 %v1249_v19, %v1249_v19  ;;  %2538 = vrcp.f32 %v1235_v11 }
 0x4ee   : > { %v776_v14 = vpop.permute.xlu0 %775 }
 0x4ef   : > { %v2070_v17 = vcombine.low %v776_v14, %v776_v14  ;;  %v2071_v18 = vcombine.high %v776_v14, %v776_v14 }
 0x4f0   : > { %v2535_v16 = vpop.eup %2534 }
 0x4f1   : > { %v1250_v20 = vmul.f32 %v2535_v16, %v2519_v47  ;;  %v1360_v23 = vsel %vm1266_vm3, %v2070_v17, 0  ;;  %v1406_v15 = vsel %vm1266_vm3, %v2071_v18, 0 }
 0x4f2   : > { %2313 = vmatpush3.bf16.msra.mxu0 %v1360_v23  ;;  %2319 = vmatpush3.bf16.msra.mxu1 %v1406_v15 }
 0x4f3   : > { %v1258_v24 = vpack.c.bf16 %v1250_v20, %v1250_v20  ;;  %2324 = vmatprep.subr.bf16.mxu0 %v2757_v5  ;;  %2330 = vmatprep.subr.bf16.mxu1 %v2757_v5 }
 0x4f4   : > { %v2537_v26 = vpop.eup %2536 }
 0x4f5   : > { %2315 = vmatmul.mubr.msk.bf16.vlgmr.msra.gmra.mxu0 %vm1166_vm4, %v1257_v25  ;;  %2321 = vmatmul.mubr.msk.bf16.vlgmr.msra.gmra.mxu1 %vm1166_vm4, %v1258_v24  ;;  %v1251_v29 = vmul.f32 %v2537_v26, %v3090_v49 }
 0x4f6   : > { %2325 = vmatpush3.bf16.msra.mxu0 %v1452_v27  ;;  %2331 = vmatpush3.bf16.msra.mxu1 %v1498_v28 }
 0x4f7   : > { %2326 = vmatprep.mubr.msk.bf16.mxu0 %vm2758_vm1, %v2757_v5  ;;  %2336 = vmatprep.subr.bf16.mxu0 %v2757_v5  ;;  %v1259_v30 = vpack.c.bf16 %v1251_v29, %v1251_v29 }
 0x4f8   : > { %2332 = vmatprep.mubr.msk.bf16.mxu1 %vm2758_vm1, %v2757_v5  ;;  %2342 = vmatprep.subr.bf16.mxu1 %v2757_v5  ;;  %v2539_v33 = vpop.eup %2538 }
 0x4f9   : > { %v1253_v36 = vmul.f32 %v2539_v33, %v3094_v51  ;;  %v2503_v51 = vld [vmem:[#allocation10 + $0x10] sm:$0xff]  }
 0x4fb   : > { %v1261_v39 = vpack.c.bf16 %v1253_v36, %v1253_v36 }
 0x4fd   : > { %2327 = vmatmul.mubr.msk.bf16.vlgmr.msra.gmra.mxu0 %vm1166_vm4, %v1259_v30 }
 0x4fe   : > { %2338 = vmatprep.mubr.msk.bf16.mxu0 %vm2758_vm1, %v2757_v5 }
 0x517   : > { %v1232_v31 = vpop.xlane.xlu1 %1231 }
 0x518   : > { %2540 = vrcp.f32 %v1232_v31 }
 0x51b   : > { %v1238_v32 = vpop.xlane.xlu1 %1237 }
 0x51c   : > { %2542 = vrcp.f32 %v1238_v32 }
 0x51f   : > { %v780_v34 = vpop.permute.xlu1 %779 }
 0x520   : > { %v2074_v35 = vcombine.low %v780_v34, %v780_v34  ;;  %v2075_v41 = vcombine.high %v780_v34, %v780_v34 }
 0x522   : > { %v1544_v37 = vsel %vm1266_vm3, %v2074_v35, 0  ;;  %v1590_v46 = vsel %vm1266_vm3, %v2075_v41, 0 }
 0x523   : > { %2337 = vmatpush3.bf16.msra.mxu0 %v1544_v37 }
 0x524   : > { %2348 = vmatprep.subr.bf16.mxu0 %v2757_v5 }
 0x525   : > { %v2541_v40 = vpop.eup %2540 }
 0x526   : > { %2339 = vmatmul.mubr.msk.bf16.vlgmr.msra.gmra.mxu0 %vm1166_vm4, %v1261_v39  ;;  %v1252_v42 = vmul.f32 %v2541_v40, %v3110_v3 }
 0x527   : > { %2349 = vmatpush3.bf16.msra.mxu0 %v2500_v38  ;;  %2352 = vmatprep.mubr.msk.bf16.mxu0 %vm2758_vm1, %v2757_v5 }
 0x528   : > { %v1260_v43 = vpack.c.bf16 %v1252_v42, %v1252_v42  ;;  %2350 = vmatprep.subr.bf16.mxu0 %v2757_v5 }
 0x529   : > { %v2543_v45 = vpop.eup %2542 }
 0x52a   : > { %2333 = vmatmul.mubr.msk.bf16.vlgmr.msra.gmra.mxu1 %vm1166_vm4, %v1260_v43  ;;  %v1254_v47 = vmul.f32 %v2543_v45, %v3114_v6 }
 0x52b   : > { %2343 = vmatpush3.bf16.msra.mxu1 %v1590_v46  ;;  %2344 = vmatprep.mubr.msk.bf16.mxu1 %vm2758_vm1, %v2757_v5 }
 0x52c   : > { %2351 = vmatpush3.bf16.msra.mxu0 %v2501_v44  ;;  %2356 = vmatprep.subr.bf16.mxu1 %v2757_v5  ;;  %v1262_v49 = vpack.c.bf16 %v1254_v47, %v1254_v47 }
 0x52d   : > { %2364 = vmatprep.subr.bf16.mxu0 %v2757_v5 }
 0x532   : > { %2345 = vmatmul.mubr.msk.bf16.vlgmr.msra.gmra.mxu1 %vm1166_vm4, %v1262_v49 }
 0x533   : > { %2357 = vmatpush3.bf16.msra.mxu1 %v2502_v48  ;;  %2360 = vmatprep.mubr.msk.bf16.mxu1 %vm2758_vm1, %v2757_v5 }
 0x534   : > { %v1304_v50 = vpop.f32.mrf.mxu0  ;;  %2358 = vmatprep.subr.bf16.mxu1 %v2757_v5 }
 0x536   : > { %v2304_v52 = vpop.f32.mrf.mxu0 }
 0x537   : > { %2359 = vmatpush3.bf16.msra.mxu1 %v2503_v51 }
 0x538   : > { %v1307_v53 = vpop.f32.mrf.mxu0  ;;  %2372 = vmatprep.subr.bf16.mxu1 %v2757_v5 }
 0x53a   : > { %v2305_v54 = vpop.f32.mrf.mxu0 }
 0x53c   : > { %v1350_v55 = vpop.f32.mrf.mxu1 }
 0x53d   : > { %v1632_v56 = vpack.c.bf16 %v1350_v55, %v1304_v50 }
 0x53e   : > { %v2310_v57 = vpop.f32.mrf.mxu1 }
 0x53f   : > { %2353 = vmatmul.mubr.msk.bf16.vlgmr.msra.gmra.mxu0 %vm797_vm2, %v1632_v56 }
 0x540   : > { %v1353_v58 = vpop.f32.mrf.mxu1  ;;  %2368 = vmatprep.mubr.msk.bf16.mxu0 %vm2758_vm1, %v2757_v5  ;;  %2365 = vmatpush3.bf16.msra.mxu0 %v2504_v60 }
 0x541   : > { %2366 = vmatprep.subr.bf16.mxu0 %v2757_v5 }
 0x542   : > { %v2311_v59 = vpop.f32.mrf.mxu1 }
 0x544   : > { %2367 = vmatpush3.bf16.msra.mxu0 %v2505_v61 }
 0x5b5   : > { %v1396_v62 = vpop.f32.mrf.mxu0  ;;  %v1442_v63 = vpop.f32.mrf.mxu1 }
 0x5b6   : > { %v1633_v1 = vpack.c.bf16 %v1442_v63, %v1396_v62 }
 0x5b7   : > { %v2316_v2 = vpop.f32.mrf.mxu0  ;;  %v2322_v3 = vpop.f32.mrf.mxu1 }
 0x5b8   : > { %2361 = vmatmul.mubr.msk.bf16.vlgmr.msra.gmra.mxu1 %vm797_vm2, %v1633_v1 }
 0x5b9   : > { %v1399_v4 = vpop.f32.mrf.mxu0  ;;  %v1445_v6 = vpop.f32.mrf.mxu1  ;;  %2373 = vmatpush3.bf16.msra.mxu1 %v2506_v0  ;;  %2376 = vmatprep.mubr.msk.bf16.mxu1 %vm2758_vm1, %v2757_v5 }
 0x5ba   : > { %2374 = vmatprep.subr.bf16.mxu1 %v2757_v5 }
 0x5bb   : > { %v2317_v8 = vpop.f32.mrf.mxu0  ;;  %v2323_v9 = vpop.f32.mrf.mxu1 }
 0x5bd   : > { %v1488_v10 = vpop.f32.mrf.mxu0  ;;  %2375 = vmatpush3.bf16.msra.mxu1 %v2507_v7 }
 0x5bf   : > { %v2328_v11 = vpop.f32.mrf.mxu0 }
 0x5c1   : > { %v1491_v12 = vpop.f32.mrf.mxu0 }
 0x5c3   : > { %v2329_v13 = vpop.f32.mrf.mxu0 }
 0x5e6   : > { %v1580_v14 = vpop.f32.mrf.mxu0 }
 0x5e8   : > { %v2340_v16 = vpop.f32.mrf.mxu0 }
 0x5ea   : > { %v1534_v17 = vpop.f32.mrf.mxu1  ;;  %v1583_v18 = vpop.f32.mrf.mxu0 }
 0x5eb   : > { %v1634_v19 = vpack.c.bf16 %v1534_v17, %v1488_v10 }
 0x5ec   : > { %v2334_v20 = vpop.f32.mrf.mxu1  ;;  %v2341_v21 = vpop.f32.mrf.mxu0 }
 0x5ed   : > { %2369 = vmatmul.mubr.msk.bf16.vlgmr.msra.gmra.mxu0 %vm797_vm2, %v1634_v19 }
 0x5ee   : > { %v1537_v22 = vpop.f32.mrf.mxu1 }
 0x5f0   : > { %v2335_v23 = vpop.f32.mrf.mxu1 }
 0x5f2   : > { %v1626_v15 = vpop.f32.mrf.mxu1 }
 0x5f3   : > { %v1635_v5 = vpack.c.bf16 %v1626_v15, %v1580_v14 }
 0x5f4   : > { %v2346_v24 = vpop.f32.mrf.mxu1 }
 0x5f5   : > { %2377 = vmatmul.mubr.msk.bf16.vlgmr.msra.gmra.mxu1 %vm797_vm2, %v1635_v5 }
 0x5f6   : > { %v1629_v25 = vpop.f32.mrf.mxu1 }
 0x5f8   : > { %v2347_v26 = vpop.f32.mrf.mxu1 }
 0x5ff   : > { %v1701_v27 = vpop.f32.mrf.mxu0 }
 0x601   : > { %v2354_v28 = vpop.f32.mrf.mxu0 }
 0x603   : > { %v1704_v29 = vpop.f32.mrf.mxu0 }
 0x605   : > { %v2355_v30 = vpop.f32.mrf.mxu0 }
 0x678   : > { %v1757_v31 = vpop.f32.mrf.mxu1 }
 0x679   : > { %v1876_v38 = vadd.f32 %v1757_v31, %v1701_v27 }
 0x67a   : > { %v2362_v32 = vpop.f32.mrf.mxu1 }
 0x67c   : > { %v1760_v33 = vpop.f32.mrf.mxu1 }
 0x67d   : > { %v1879_v42 = vadd.f32 %v1760_v33, %v1704_v29 }
 0x67e   : > { %v2363_v34 = vpop.f32.mrf.mxu1 }
 0x6ad   : > { %v1813_v35 = vpop.f32.mrf.mxu0 }
 0x6ae   : > { %v1877_v40 = vadd.f32 %v1876_v38, %v1813_v35 }
 0x6af   : > { %v2370_v36 = vpop.f32.mrf.mxu0 }
 0x6b1   : > { %v1816_v37 = vpop.f32.mrf.mxu0 }
 0x6b2   : > { %v1880_v45 = vadd.f32 %v1879_v42, %v1816_v37 }
 0x6b3   : > { %v2371_v39 = vpop.f32.mrf.mxu0 }
 0x6b5   : > { %v1869_v41 = vpop.f32.mrf.mxu1 }
 0x6b6   : > { %v1878_v43 = vadd.f32 %v1877_v40, %v1869_v41 }
 0x6b7   : > { %v2378_v44 = vpop.f32.mrf.mxu1 }
 0x6b8   : > { %1882 = vst [vmem:[%s354_s13] sm:$0xff] %v1878_v43 }
 0x6b9   : > { %v1872_v46 = vpop.f32.mrf.mxu1 }
 0x6ba   : > { %v1881_v47 = vadd.f32 %v1880_v45, %v1872_v46 }
 0x6bb   : > { %v2379_v48 = vpop.f32.mrf.mxu1 }
 0x6bc   : > { %1883 = vst [vmem:[%s354_s13 + $0x8] sm:$0xff] %v1881_v47 }
 0x6bd   : > { %2689 = shalt.err (!%p2686_p3)
}
 0x6be   : > { %s2690_s22 = scalar_lea.hbm %s3175_s15, 256  ;;  %s2694_s10 = scalar_lea.hbm %s3224_s7, 1024 }
 0x6bf   : > { %p2691_p6 = scmp.ne.s32.totalorder %s3175_s15, %s2690_s22  ;;  %p2695_p9 = scmp.lt.s32.totalorder %s3175_s15, %s3224_s7 }
 0x6c0   : > { %p2696_p2 = scmp.lt.s32.totalorder %s2694_s10, %s2690_s22 }
 0x6c1   : > { %p2692_p4 = pnand %p2691_p6, %p3247_p11 }
 0x6c2   : > { %p2697_p0 = por %p2696_p2, %p2695_p9 }
 0x6c3   : > { %p2693_p8 = pneg %p2692_p4 }
 0x6c5   : > { %p2698_p5 = pnand %p2697_p0, %p2693_p8 }
 0x6c7   : > { %2701 = shalt.err (!%p2698_p5)
}
 0x6c8   : > { %s2763_s3 = smov 128   ;;  %s2764_s11 = smov 8  }
 0x6c9   : > { %2398 = dma.vmem_to_hbm [thread:$0]  (%p3247_p11), %s3170_s18, 256, %s3175_s15, %s1885_s30, %s2763_s3, %s2763_s3, %s2764_s11  }
 0x6ca PF: > { %p2430_p7 = scmp.ge.s32.totalorder %s2748_s27, 2  ;;  %s1913_s9 = sand.u32 1, %s2736_s24  }
 0x6cb   : > { %p3248_p1 = scmp.ne.s32.totalorder %s3233_s8, 0  ;;  %s1914_s28 = scalar_lea.sflag [#allocation4], %s1913_s9 }
 0x6cd   : > { %p2418_p12 = pnand %p2430_p7, %p3248_p1 }
 0x6cf   : > { %p2419_p13 = pneg %p2418_p12 }
 0x6d1   : > { %2731 = dma.done.wait (%p2419_p13), %s1914_s28, 256  }
 0x6d2   : > { %2733 = vsyncadd (%p2419_p13), %s1914_s28, 4294967040  ;;  %p22_p10 = scmp.ge.s32.totalorder %s2904_s21, 6   ;;  %s3249_s24 = smov %s2740_s25 }
 0x6d3   : > { %s3250_s25 = smov %s2744_s26  ;;  %s3251_s26 = smov %s2920_s29 }
 0x6d4   : > { %s3252_s27 = smov %s2904_s21  ;;  %24 = sbr.rel (!%p22_p10) target bundleno = 9 (0x9), region = 109 }
 0x6d9   :  { %1919 = vsyncpa [#allocation3], 1 }
 0x6da   :  { %1921 = vsyncpa [#allocation3 + $0x1], 1 }
 0x6db   :  { %1922 = vsyncpa [#allocation6], 1 }
 0x6dc   :  { %1923 = vsyncpa [#allocation9], 1 }
 0x6dd   :  { %1924 = vsyncpa [#allocation4], 1 }
 0x6de   :  { %1926 = vsyncpa [#allocation4 + $0x1], 1 }

// kernel: tpu_custom_call.1
= control target key start
LH: loop header
LB: loop body
LE: loop exit
PB: predicated region body
PF: predicated region fallthrough
CT: control target
= control target key end

     0   :  { %s3217_s0 = inlined_call_operand.hbm [shape: bf16[64,128], index: 0, kind: input, shape index: {}]   ;;  %s3218_s1 = inlined_call_operand.vmem [shape: f32[1,128], index: 1, kind: input, shape index: {}]   ;;  %s3219_s2 = inlined_call_operand.vmem [shape: f32[1,128], index: 2, kind: input, shape index: {}]   ;;  %s3220_s3 = inlined_call_operand.hbm [shape: bf16[128,128], index: 3, kind: input, shape index: {}]   ;;  %s3221_s4 = inlined_call_operand.hbm [shape: bf16[128,128], index: 4, kind: input, shape index: {}]   ;;  %s3222_s5 = inlined_call_operand.hbm [shape: bf16[128,128], index: 5, kind: input, shape index: {}]   ;;  %s3223_s6 = inlined_call_operand.hbm [shape: bf16[4,32,128], index: 6, kind: input, shape index: {}]   ;;  %s3224_s7 = inlined_call_operand.hbm [shape: f32[64,128], index: 7, kind: output, shape index: {}]  }
   0x1   :  { %3231 = sst [smem:[#allocation16_spill]] %s3220_s3 }
   0x2   :  { %12 = vsyncpa [#allocation3], 0 }
   0x3   :  { %14 = vsyncpa [#allocation3 + $0x1], 0 }
   0x4   :  { %15 = vsyncpa [#allocation6], 0 }
   0x5   :  { %16 = vsyncpa [#allocation9], 0 }
   0x6   :  { %17 = vsyncpa [#allocation4], 0 }
   0x7   :  { %19 = vsyncpa [#allocation4 + $0x1], 0  ;;  %s2805_s24 = smov 0   ;;  %s2807_s25 = smov 0  }
   0x8   :  { %s2809_s26 = smov 0   ;;  %s2811_s27 = smov 0  }
   0x9 LB: > { %s2826_s28 = sadd.s32 4294967295, %s2748_s27   ;;  %s2009_s29 = sadd.s32 4294967294, %s2748_s27   ;;  %s2748_s27 = sphi %s2811_s27, %s3252_s27   ;;  %s2744_s26 = sphi %s2809_s26, %s3251_s26   ;;  %s2740_s25 = sphi %s2807_s25, %s3250_s25   ;;  %s2736_s24 = sphi %s2805_s24, %s3249_s24  }
   0xa   : > { %p45_p0 = scmp.ne.s32.totalorder %s2740_s25, %s2736_s24  ;;  %p3225_p1 = scmp.eq.s32.totalorder %s2826_s28, 0 }
   0xb   : > { %p195_p2 = scmp.eq.s32.totalorder %s2826_s28, 3  ;;  %p201_p3 = scmp.eq.s32.totalorder %s2009_s29, 3 }
   0xc   : > { %p2835_p4 = por %p3225_p1, %p45_p0  ;;  %p2010_p5 = scmp.ge.s32.totalorder %s2748_s27, 1 }
   0xd   : > { %p2840_p6 = por %p201_p3, %p45_p0  ;;  %p208_p7 = scmp.lt.s32.totalorder %s2748_s27, 5 }
   0xe   : > { %s3232_s30 = scalar_select %p2835_p4, 1, 0 }
   0xf   : > { %s3233_s8 = scalar_select %p2840_p6, 1, 0 }
  0x10   : > { %p2845_p8 = pnand %p2010_p5, %p208_p7  ;;  %s2750_s10 = smov [#allocation5]  }
  0x11   : > { %s226_s11 = sshll.u32 %s2750_s10, 4  ;;  %s2751_s13 = smov [#allocation8]   ;;  %s227_s11 = int_to_ptr.vmem [resolvable:$true] %s226_s11 }
  0x12   : > { %s3234_s9 = scalar_select %p2845_p8, 1, 0 }
  0x13   : > { %p2400_p9 = pneg %p2845_p8  ;;  %s252_s14 = sshll.u32 %s2751_s13, 4  ;;  %s253_s14 = int_to_ptr.vmem [resolvable:$true] %s252_s14 }
  0x14   : > { %s2752_s15 = smov [#allocation7]   ;;  %s2555_s17 = scalar_lea.vmem %s227_s11, 1024 }
  0x15   : > { %p2853_p10 = pnand %p2400_p9, %p3225_p1  ;;  %s239_s16 = sshll.u32 %s2752_s15, 4  ;;  %s240_s16 = int_to_ptr.vmem [resolvable:$true] %s239_s16 }
  0x16   : > { %p2556_p12 = scmp.ne.s32.totalorder %s227_s11, %s2555_s17  ;;  %p2563_p3 = scmp.lt.s32.totalorder %s227_s11, %s227_s11 }
  0x17   : > { %p2546_p11 = pneg %p2853_p10  ;;  %p2564_p5 = scmp.lt.s32.totalorder %s2555_s17, %s2555_s17 }
  0x19   : > { %p2558_p13 = pnand %p2556_p12, %p2546_p11  ;;  %p2565_p7 = por %p2564_p5, %p2563_p3 }
  0x1b   : > { %p2559_p0 = pneg %p2558_p13 }
  0x1d   : > { %p2566_p9 = pnand %p2565_p7, %p2559_p0 }
  0x1f   : > { %2569 = shalt.err (!%p2566_p9)
}
  0x20   : > { %s3226_s18 = smov 64   ;;  %s3227_s19 = smov 4  }
  0x21   : > { %s3236_s3 = sld [smem:[#allocation16_spill]]  ;;  %s2581_s22 = scalar_lea.vmem %s253_s14, 1024 }
  0x22   : > { %p2582_p12 = scmp.ne.s32.totalorder %s253_s14, %s2581_s22  ;;  %p2589_p0 = scmp.lt.s32.totalorder %s253_s14, %s253_s14 }
  0x23   : > { %p2590_p5 = scmp.lt.s32.totalorder %s2581_s22, %s2581_s22 }
  0x24   : > { %p2584_p13 = pnand %p2582_p12, %p2546_p11 }
  0x25   : > { %p2591_p7 = por %p2590_p5, %p2589_p0 }
  0x26   : > { %p2585_p3 = pneg %p2584_p13 }
  0x27   : > { %2403 = dma.hbm_to_vmem [thread:$0]  (!%p2853_p10), %s3236_s3, 1024, %s227_s11, [#allocation6], %s3226_s18, %s3226_s18, %s3227_s19  }
  0x28   : > { %p2592_p9 = pnand %p2591_p7, %p2585_p3 }
  0x2a   : > { %2595 = shalt.err (!%p2592_p9)
}
  0x2b   : > { %2409 = dma.hbm_to_vmem [thread:$0]  (!%p2853_p10), %s3222_s5, 1024, %s253_s14, [#allocation9], %s3226_s18, %s3226_s18, %s3227_s19  }
  0x2c   : > { %s2607_s10 = scalar_lea.vmem %s240_s16, 1024  ;;  %p2615_p0 = scmp.lt.s32.totalorder %s240_s16, %s240_s16 }
  0x2d   : > { %p2608_p1 = scmp.ne.s32.totalorder %s240_s16, %s2607_s10  ;;  %p2616_p3 = scmp.lt.s32.totalorder %s2607_s10, %s2607_s10 }
  0x2f   : > { %p2610_p12 = pnand %p2608_p1, %p2546_p11  ;;  %p2617_p5 = por %p2616_p3, %p2615_p0 }
  0x31   : > { %p2611_p13 = pneg %p2610_p12 }
  0x33   : > { %p2618_p7 = pnand %p2617_p5, %p2611_p13 }
  0x35   : > { %2621 = shalt.err (!%p2618_p7)
}
  0x36   : > { %2406 = dma.hbm_to_vmem [thread:$0]  (!%p2853_p10), %s3221_s4, 1024, %s240_s16, [#allocation6], %s3226_s18, %s3226_s18, %s3227_s19  }
  0x37   : > { %s2755_s14 = smov [#allocation10]  }
  0x38   : > { %s265_s15 = sshll.u32 %s2755_s14, 4  ;;  %s266_s15 = int_to_ptr.vmem [resolvable:$true] %s265_s15 }
  0x39   : > { %s2633_s17 = scalar_lea.vmem %s266_s15, 1024  ;;  %p2641_p13 = scmp.lt.s32.totalorder %s266_s15, %s266_s15 }
  0x3a   : > { %p2634_p1 = scmp.ne.s32.totalorder %s266_s15, %s2633_s17  ;;  %p2642_p0 = scmp.lt.s32.totalorder %s2633_s17, %s2633_s17 }
  0x3c   : > { %p2636_p9 = pnand %p2634_p1, %p2546_p11  ;;  %p2643_p3 = por %p2642_p0, %p2641_p13 }
  0x3e   : > { %p2637_p12 = pneg %p2636_p9 }
  0x40   : > { %p2644_p5 = pnand %p2643_p3, %p2637_p12 }
  0x42   : > { %2647 = shalt.err (!%p2644_p5)
}
  0x43   : > { %2412 = dma.hbm_to_vmem [thread:$0]  (!%p2853_p10), %s3223_s6, 1024, %s266_s15, [#allocation9], %s3226_s18, %s3226_s18, %s3227_s19  }
  0x44   : > { %s2904_s21 = sadd.s32 1, %s2748_s27   ;;  %s32_s12 = sadd.s32 1, %s2744_s26 }
  0x45   : > { %s29_s22 = ssub.s32 %s2748_s27, %s2904_s21  ;;  %p39_p11 = scmp.ne.s32.totalorder %s2744_s26, %s2740_s25 }
  0x46   : > { %p30_p7 = scmp.eq.s32.totalorder %s29_s22, 0  ;;  %p40_p1 = scmp.eq.s32.totalorder %s2748_s27, 0 }
  0x47   : > { %p2914_p9 = por %p195_p2, %p39_p11  ;;  %p2425_p12 = scmp.lt.s32.totalorder %s2748_s27, 4 }
  0x48   : > { %s2920_s29 = scalar_select %p30_p7, %s2744_s26, %s32_s12  }
  0x49   : > { %s3237_s23 = scalar_select %p2914_p9, 1, 0 }
  0x4a   : > { %p41_p13 = por %p40_p1, %p39_p11  ;;  %s279_s10 = sand.u32 1, %s2744_s26  }
  0x4b   : > { %s2016_s11 = sshll.u32 %s279_s10, 3  ;;  %s2109_s13 = sshll.u32 %s2748_s27, 7 }
  0x4c   : > { %s2927_s17 = scalar_lea.hbm %s3217_s0, %s2109_s13  ;;  %s283_s16 = scalar_lea.vmem [#allocation2], %s2016_s11 }
  0x4d   : > { %s290_s20 = sshll.u32 %s283_s16, 4  ;;  %p2931_p2 = pnand %p2425_p12, %p41_p13  ;;  %s2929_s20 = int_to_ptr.vmem [resolvable:$true] %s290_s20 }
  0x4e   : > { %s2935_s12 = scalar_lea.sflag [#allocation3], %s279_s10  ;;  %s2648_s18 = scalar_lea.hbm %s2927_s17, 128 }
  0x4f   : > { %p2649_p10 = scmp.ne.s32.totalorder %s2927_s17, %s2648_s18  ;;  %p2650_p0 = pneg %p2931_p2 }
  0x50   : > { %s2653_s11 = scalar_lea.hbm %s3217_s0, 512  ;;  %p2654_p11 = scmp.lt.s32.totalorder %s2927_s17, %s3217_s0 }
  0x51   : > { %p2651_p3 = pnand %p2650_p0, %p2649_p10  ;;  %p2655_p7 = scmp.lt.s32.totalorder %s2653_s11, %s2648_s18 }
  0x53   : > { %p2652_p5 = pneg %p2651_p3  ;;  %p2656_p1 = por %p2655_p7, %p2654_p11 }
  0x55   : > { %p2657_p12 = pnand %p2656_p1, %p2652_p5 }
  0x57   : > { %2660 = shalt.err (!%p2657_p12)
}
  0x58   : > { %s2661_s10 = scalar_lea.vmem %s2929_s20, 128  ;;  %s2756_s19 = smov [#allocation2]  }
  0x59   : > { %p2662_p13 = scmp.ne.s32.totalorder %s2929_s20, %s2661_s10  ;;  %s2666_s3 = sshll.u32 %s2756_s19, 4  ;;  %s2667_s3 = int_to_ptr.vmem [resolvable:$false] %s2666_s3 }
  0x5a   : > { %s2668_s13 = scalar_lea.vmem %s2667_s3, 256  ;;  %p2669_p3 = scmp.lt.s32.totalorder %s2929_s20, %s2667_s3 }
  0x5b   : > { %p2664_p6 = pnand %p2662_p13, %p2650_p0  ;;  %p2670_p9 = scmp.lt.s32.totalorder %s2668_s13, %s2661_s10 }
  0x5d   : > { %p2665_p10 = pneg %p2664_p6  ;;  %p2671_p4 = por %p2670_p9, %p2669_p3 }
  0x5f   : > { %p2672_p8 = pnand %p2671_p4, %p2665_p10 }
  0x61   : > { %2675 = shalt.err (!%p2672_p8)
}
  0x62   : > { %s3239_s18 = smov 4   ;;  %s3240_s14 = smov 64  }
  0x63   : > { %2416 = dma.hbm_to_vmem [thread:$0]  (!%p2931_p2), %s2927_s17, 128, %s2929_s20, %s2935_s12, %s3240_s14, %s3240_s14, %s3239_s18  }
  0x64   : > { %p3241_p6 = scmp.ne.s32.totalorder %s3234_s9, 0 }
  0x65   : > { %s2962_s19 = sand.u32 (!%p3241_p6), 1, %s2740_s25   ;;  %p3242_p4 = scmp.ne.s32.totalorder (!%p3241_p6), %s3232_s30, 0 }
  0x66   : > { %302 = sbr.rel (%p3241_p6) target bundleno = 1738 (0x6ca), region = 48  ;;  %s2020_s3 = sshll.u32 (!%p3241_p6), %s2962_s19, 3 }
  0x67   : > { %s305_s11 = scalar_lea.sflag (!%p3241_p6), [#allocation3], %s2962_s19  ;;  %s308_s15 = scalar_lea.vmem (!%p3241_p6), [#allocation2], %s2020_s3 }
  0x6b   : > { %2719 = dma.done.wait (%p3242_p4), %s305_s11, 128  }
  0x6c   : > { %2721 = vsyncadd (%p3242_p4), %s305_s11, 4294967168  ;;  %p3243_p8 = scmp.eq.s32.totalorder %s2826_s28, 0 }
  0x6e   : > { %2723 = dma.done.wait (%p3243_p8), [#allocation6], 2048   ;;  %p3244_p9 = pmov %p3243_p8 }
  0x6f   : > { %p3245_p2 = pmov %p3243_p8 }
  0x70   : > { %2725 = vsyncadd (%p3244_p9), [#allocation6], 4294965248 }
  0x71   : > { %2727 = dma.done.wait (%p3245_p2), [#allocation9], 2048   ;;  %p3246_p0 = pmov %p3245_p2 }
  0x72   : > { %v2118_v0 = vld [vmem:[%s308_s15] sm:$0xff]   ;;  %v2757_v5 = vmov 0.0   ;;  %v370_v6 = vlaneseq  ;;  %v2480_v20 = vld [vmem:[#allocation5 + $0x28] sm:$0xff]   ;;  %v2482_v22 = vld [vmem:[#allocation5 + $0x20] sm:$0xff]   ;;  %vm2758_vm1 = vmmov 0   ;;  %vm797_vm2 = vcmask 261120  }
  0x73   : > { %2729 = vsyncadd (%p3246_p0), [#allocation9], 4294965248  ;;  %v2119_v1 = vunpack.c.l.bf16 %v2118_v0  ;;  %v2120_v2 = vunpack.c.h.bf16 %v2118_v0  ;;  %v2476_v3 = vld [vmem:[#allocation5 + $0x38] sm:$0xff]   ;;  %2192 = vmatprep.subr.bf16.mxu0 %v2757_v5  ;;  %2212 = vmatprep.subr.bf16.mxu1 %v2757_v5  ;;  %v2478_v18 = vld [vmem:[#allocation5 + $0x30] sm:$0xff]   ;;  %s2759_s22 = smov 96   ;;  %s2760_s12 = smov 32  }
  0x74   : > { %v2477_v4 = vld [vmem:[#allocation7 + $0x38] sm:$0xff]   ;;  %2193 = vmatpush3.bf16.msra.mxu0 %v2476_v3  ;;  %v371_v7 = vand.u32 127, %v370_v6  ;;  %v2479_v19 = vld [vmem:[#allocation7 + $0x30] sm:$0xff]   ;;  %v2481_v21 = vld [vmem:[#allocation7 + $0x28] sm:$0xff]   ;;  %2208 = vmatprep.mubr.msk.bf16.mxu0 %vm2758_vm1, %v2757_v5  ;;  %s2761_s16 = smov 64   ;;  %vm1266_vm3 = vcmask 1043456  }
  0x75   : > { %362 = vadd.xlane.f32.xlu0 %v2119_v1  ;;  %2213 = vmatpush3.bf16.msra.mxu1 %v2477_v4  ;;  %v2483_v23 = vld [vmem:[#allocation7 + $0x20] sm:$0xff]   ;;  %v2484_v24 = vld [vmem:[#allocation5 + $0x18] sm:$0xff]   ;;  %v2486_v26 = vld [vmem:[#allocation5 + $0x10] sm:$0xff]   ;;  %vm1166_vm4 = vcmask 64512   ;;  %s2025_s10 = sshll.u32 %s2962_s19, 4  ;;  %s2116_s14 = sshll.u32 %s2826_s28, 8 }
  0x76   : > { %2194 = vmatprep.subr.bf16.mxu0 %v2757_v5  ;;  %2214 = vmatprep.subr.bf16.mxu1 %v2757_v5  ;;  %vm372_vm0 = vcmp.lt.s32.totalorder %v371_v7, 64  ;;  %v2485_v25 = vld [vmem:[#allocation7 + $0x18] sm:$0xff]   ;;  %v2487_v27 = vld [vmem:[#allocation7 + $0x10] sm:$0xff]   ;;  %v2488_v28 = vld [vmem:[#allocation5 + $0x8] sm:$0xff]   ;;  %s354_s13 = scalar_lea.vmem [#allocation11], %s2025_s10  ;;  %s3175_s15 = scalar_lea.hbm %s3224_s7, %s2116_s14 }
  0x77   : > { %2228 = vmatprep.mubr.msk.bf16.mxu1 %vm2758_vm1, %v2757_v5  ;;  %v2489_v29 = vld [vmem:[#allocation7 + $0x8] sm:$0xff]   ;;  %v2490_v30 = vld [vmem:[#allocation5] sm:$0xff]   ;;  %v2026_v40 = vld [vmem:[%s3218_s1] ss:$0 sm:$0xff]  ;;  %s1898_s18 = sshll.u32 %s354_s13, 4  ;;  %s1885_s30 = scalar_lea.sflag [#allocation4], %s2962_s19  ;;  %s3170_s18 = int_to_ptr.vmem [resolvable:$true] %s1898_s18 }
  0x78   : > { %2195 = vmatpush3.bf16.msra.mxu0 %v2478_v18  ;;  %v2491_v31 = vld [vmem:[#allocation7] sm:$0xff]   ;;  %v2027_v44 = vld [vmem:[%s3219_s2] ss:$0 sm:$0xff]  ;;  %v2492_v48 = vld [vmem:[#allocation8 + $0x38] sm:$0xff]   ;;  %s2676_s9 = scalar_lea.vmem %s3170_s18, 256  ;;  %p3247_p11 = scmp.ne.s32.totalorder %s3237_s23, 0 }
  0x79   : > { %364 = vadd.xlane.f32.xlu0 %v2120_v2  ;;  %2215 = vmatpush3.bf16.msra.mxu1 %v2479_v19  ;;  %v2493_v50 = vld [vmem:[#allocation8 + $0x30] sm:$0xff]   ;;  %v2494_v51 = vld [vmem:[#allocation8 + $0x28] sm:$0xff]   ;;  %v2495_v52 = vld [vmem:[#allocation8 + $0x20] sm:$0xff]   ;;  %p2677_p5 = scmp.ne.s32.totalorder %s3170_s18, %s2676_s9  ;;  %s2762_s28 = smov [#allocation11]  }
  0x7a   : > { %2196 = vmatprep.subr.bf16.mxu0 %v2757_v5  ;;  %2216 = vmatprep.subr.bf16.mxu1 %v2757_v5  ;;  %v2496_v53 = vld [vmem:[#allocation8 + $0x18] sm:$0xff]   ;;  %v2497_v54 = vld [vmem:[#allocation8 + $0x10] sm:$0xff]   ;;  %v2498_v55 = vld [vmem:[#allocation8 + $0x8] sm:$0xff]   ;;  %s2680_s17 = sshll.u32 %s2762_s28, 4  ;;  %s2681_s17 = int_to_ptr.vmem [resolvable:$false] %s2680_s17 }
  0x7b   : > { %v2499_v56 = vld [vmem:[#allocation8] sm:$0xff]   ;;  %p2678_p7 = pnand %p2677_p5, %p3247_p11  ;;  %s2682_s20 = scalar_lea.vmem %s2681_s17, 512 }
  0x7c   : > { %2197 = vmatpush3.bf16.msra.mxu0 %v2480_v20  ;;  %p2683_p12 = scmp.lt.s32.totalorder %s3170_s18, %s2681_s17  ;;  %p2684_p13 = scmp.lt.s32.totalorder %s2682_s20, %s2676_s9 }
  0x7d   : > { %2217 = vmatpush3.bf16.msra.mxu1 %v2481_v21  ;;  %2198 = vmatprep.subr.bf16.mxu0 %v2757_v5  ;;  %p2679_p1 = pneg %p2678_p7 }
  0x7e   : > { %2218 = vmatprep.subr.bf16.mxu1 %v2757_v5  ;;  %p2685_p10 = por %p2684_p13, %p2683_p12 }
  0x80   : > { %2199 = vmatpush3.bf16.msra.mxu0 %v2482_v22  ;;  %p2686_p3 = pnand %p2685_p10, %p2679_p1 }
  0x81   : > { %2219 = vmatpush3.bf16.msra.mxu1 %v2483_v23  ;;  %2200 = vmatprep.subr.bf16.mxu0 %v2757_v5 }
  0x82   : > { %2220 = vmatprep.subr.bf16.mxu1 %v2757_v5 }
  0x84   : > { %2201 = vmatpush3.bf16.msra.mxu0 %v2484_v24 }
  0x85   : > { %2221 = vmatpush3.bf16.msra.mxu1 %v2485_v25  ;;  %2202 = vmatprep.subr.bf16.mxu0 %v2757_v5 }
  0x86   : > { %2222 = vmatprep.subr.bf16.mxu1 %v2757_v5 }
  0x88   : > { %2203 = vmatpush3.bf16.msra.mxu0 %v2486_v26 }
  0x89   : > { %2223 = vmatpush3.bf16.msra.mxu1 %v2487_v27  ;;  %2204 = vmatprep.subr.bf16.mxu0 %v2757_v5 }
  0x8a   : > { %2224 = vmatprep.subr.bf16.mxu1 %v2757_v5 }
  0x8c   : > { %2205 = vmatpush3.bf16.msra.mxu0 %v2488_v28 }
  0x8d   : > { %2225 = vmatpush3.bf16.msra.mxu1 %v2489_v29  ;;  %2206 = vmatprep.subr.bf16.mxu0 %v2757_v5 }
  0x8e   : > { %2226 = vmatprep.subr.bf16.mxu1 %v2757_v5 }
  0x90   : > { %2207 = vmatpush3.bf16.msra.mxu0 %v2490_v30 }
  0x91   : > { %2227 = vmatpush3.bf16.msra.mxu1 %v2491_v31  ;;  %2232 = vmatprep.subr.bf16.mxu0 %v2757_v5 }
  0x92   : > { %2252 = vmatprep.subr.bf16.mxu1 %v2757_v5 }
  0xfe   : > { %v363_v8 = vpop.xlane.xlu0 %362 }
  0xff   : > { %v366_v9 = vmul.f32 0.015625, %v363_v8 }
 0x101   : > { %v368_v10 = vsub.f32 %v2119_v1, %v366_v9 }
 0x102   : > { %v365_v11 = vpop.xlane.xlu0 %364 }
 0x103   : > { %v367_v12 = vmul.f32 0.015625, %v365_v11  ;;  %v373_v13 = vsel %vm372_vm0, %v368_v10, 0.0 }
 0x104   : > { %v375_v14 = vmul.f32 %v373_v13, %v373_v13 }
 0x105   : > { %v369_v15 = vsub.f32 %v2120_v2, %v367_v12 }
 0x106   : > { %377 = vadd.xlane.f32.xlu1 %v375_v14 }
 0x107   : > { %v374_v16 = vsel %vm372_vm0, %v369_v15, 0.0 }
 0x108   : > { %v376_v17 = vmul.f32 %v374_v16, %v374_v16 }
 0x10a   : > { %379 = vadd.xlane.f32.xlu1 %v376_v17 }
 0x18f   : > { %v378_v32 = vpop.xlane.xlu1 %377 }
 0x190   : > { %v381_v33 = vmul.f32 0.015625, %v378_v32 }
 0x192   : > { %v383_v34 = vadd.f32 1e-05, %v381_v33 }
 0x193   : > { %v380_v35 = vpop.xlane.xlu1 %379 }
 0x194   : > { %2508 = vrsqrt.f32 %v383_v34  ;;  %v382_v36 = vmul.f32 0.015625, %v380_v35 }
 0x196   : > { %v384_v37 = vadd.f32 1e-05, %v382_v36 }
 0x198   : > { %2510 = vrsqrt.f32 %v384_v37 }
 0x1a1   : > { %v2509_v38 = vpop.eup %2508 }
 0x1a2   : > { %v387_v39 = vmul.f32 %v2509_v38, %v373_v13 }
 0x1a4   : > { %v396_v43 = vmul.f32 %v2026_v40, %v387_v39 }
 0x1a5   : > { %v2511_v41 = vpop.eup %2510 }
 0x1a6   : > { %v388_v42 = vmul.f32 %v2511_v41, %v374_v16  ;;  %v405_v46 = vadd.f32 %v2027_v44, %v396_v43 }
 0x1a8   : > { %v397_v45 = vmul.f32 %v2026_v40, %v388_v42 }
 0x1aa   : > { %v406_v47 = vadd.f32 %v2027_v44, %v397_v45 }
 0x1ac   : > { %v407_v49 = vpack.c.bf16 %v406_v47, %v405_v46 }
 0x1ae   : > { %2209 = vmatmul.mubr.bf16.vlgmr.msra.gmra.mxu0 %v407_v49  ;;  %2229 = vmatmul.mubr.bf16.vlgmr.msra.gmra.mxu1 %v407_v49 }
 0x1af   : > { %2233 = vmatpush3.bf16.msra.mxu0 %v2492_v48  ;;  %2248 = vmatprep.mubr.msk.bf16.mxu0 %vm2758_vm1, %v2757_v5 }
 0x1b0   : > { %2234 = vmatprep.subr.bf16.mxu0 %v2757_v5  ;;  %2254 = vmatprep.mubr.msk.bf16.mxu1 %vm2758_vm1, %v2757_v5 }
 0x1b3   : > { %2235 = vmatpush3.bf16.msra.mxu0 %v2493_v50 }
 0x1b4   : > { %2236 = vmatprep.subr.bf16.mxu0 %v2757_v5 }
 0x1b7   : > { %2237 = vmatpush3.bf16.msra.mxu0 %v2494_v51 }
 0x1b8   : > { %2238 = vmatprep.subr.bf16.mxu0 %v2757_v5 }
 0x1bb   : > { %2239 = vmatpush3.bf16.msra.mxu0 %v2495_v52 }
 0x1bc   : > { %2240 = vmatprep.subr.bf16.mxu0 %v2757_v5 }
 0x1bf   : > { %2241 = vmatpush3.bf16.msra.mxu0 %v2496_v53 }
 0x1c0   : > { %2242 = vmatprep.subr.bf16.mxu0 %v2757_v5 }
 0x1c3   : > { %2243 = vmatpush3.bf16.msra.mxu0 %v2497_v54 }
 0x1c4   : > { %2244 = vmatprep.subr.bf16.mxu0 %v2757_v5 }
 0x1c7   : > { %2245 = vmatpush3.bf16.msra.mxu0 %v2498_v55 }
 0x1c8   : > { %2246 = vmatprep.subr.bf16.mxu0 %v2757_v5 }
 0x1cb   : > { %2247 = vmatpush3.bf16.msra.mxu0 %v2499_v56 }
 0x1cc   : > { %2276 = vmatprep.subr.bf16.mxu0 %v2757_v5 }
 0x1ce   : > { %2249 = vmatmul.mubr.bf16.vlgmr.msra.gmra.mxu0 %v407_v49 }
 0x1cf   : > { %2278 = vmatprep.mubr.msk.bf16.mxu0 %vm2758_vm1, %v2757_v5 }
 0x26e   : > { %v506_v57 = vpop.f32.mrf.mxu0  ;;  %v614_v58 = vpop.f32.mrf.mxu1 }
 0x26f   : > { %v2112_v59 = vpack.c.bf16 %v614_v58, %v614_v58  ;;  %v513_v1 = vmul.f32 0.17677669, %v506_v57 }
 0x270   : > { %v2210_v60 = vpop.f32.mrf.mxu0  ;;  %v2230_v61 = vpop.f32.mrf.mxu1 }
 0x271   : > { %v802_v62 = vsel %vm797_vm2, %v2112_v59, 0  ;;  %v2110_v9 = vpack.c.bf16 %v513_v1, %v513_v1 }
 0x272   : > { %v509_v63 = vpop.f32.mrf.mxu0  ;;  %v617_v0 = vpop.f32.mrf.mxu1  ;;  %2253 = vmatpush3.bf16.xpose.msra.mxu1 %v802_v62 }
 0x273   : > { %v514_v2 = vmul.f32 0.17677669, %v509_v63  ;;  %v621_v3 = vpack.c.bf16 %v617_v0, %v614_v58  ;;  %2258 = vmatprep.subr.bf16.mxu1 %v2757_v5  ;;  %v2113_v8 = vpack.c.bf16 %v617_v0, %v617_v0 }
 0x274   : > { %v2211_v4 = vpop.f32.mrf.mxu0  ;;  %v2231_v6 = vpop.f32.mrf.mxu1 }
 0x275   : > { %v515_v7 = vpack.c.bf16 %v514_v2, %v513_v1  ;;  %752 = vrot.lane.b32.xlu0 %v621_v3, %s2759_s22  ;;  %v848_v10 = vsel %vm797_vm2, %v2113_v8, 0  ;;  %v2111_v11 = vpack.c.bf16 %v514_v2, %v514_v2 }
 0x277   : > { %729 = vrot.lane.b32.xlu1 %v515_v7, %s2759_s22 }
 0x279   : > { %756 = vrot.lane.b32.xlu0 %v621_v3, %s2760_s12  ;;  %2255 = vmatmul.mubr.msk.bf16.vlgmr.msra.gmra.mxu1 %vm797_vm2, %v2110_v9 }
 0x27a   : > { %2259 = vmatpush3.bf16.xpose.msra.mxu1 %v848_v10  ;;  %2260 = vmatprep.mubr.msk.bf16.mxu1 %vm2758_vm1, %v2757_v5 }
 0x27b   : > { %754 = vrot.lane.b32.xlu1 %v621_v3, %s2761_s16  ;;  %2264 = vmatprep.subr.bf16.mxu1 %v2757_v5 }
 0x27f   : > { %731 = vrot.lane.b32.xlu1 %v515_v7, %s2761_s16 }
 0x281   : > { %2261 = vmatmul.mubr.msk.bf16.vlgmr.msra.gmra.mxu1 %vm797_vm2, %v2111_v11 }
 0x282   : > { %2266 = vmatprep.mubr.msk.bf16.mxu1 %vm2758_vm1, %v2757_v5 }
 0x283   : > { %733 = vrot.lane.b32.xlu1 %v515_v7, %s2760_s12 }
 0x28e   : > { %v720_v12 = vpop.f32.mrf.mxu0 }
 0x28f   : > { %v2114_v36 = vpack.c.bf16 %v720_v12, %v720_v12 }
 0x290   : > { %v2250_v13 = vpop.f32.mrf.mxu0 }
 0x291   : > { %v1268_v40 = vsel %vm1266_vm3, %v2114_v36, 0 }
 0x292   : > { %v723_v14 = vpop.f32.mrf.mxu0 }
 0x293   : > { %v3036_v15 = vpack.c.bf16 %v723_v14, %v720_v12  ;;  %v2115_v42 = vpack.c.bf16 %v723_v14, %v723_v14 }
 0x294   : > { %v2251_v16 = vpop.f32.mrf.mxu0 }
 0x295   : > { %v1314_v44 = vsel %vm1266_vm3, %v2115_v42, 0 }
 0x2e7   : > { %v753_v17 = vpop.permute.xlu0 %752 }
 0x2e8   : > { %v2062_v18 = vcombine.low %v753_v17, %v753_v17  ;;  %v2063_v22 = vcombine.high %v753_v17, %v753_v17 }
 0x2e9   : > { %v730_v19 = vpop.permute.xlu1 %729 }
 0x2ea   : > { %v894_v20 = vsel %vm797_vm2, %v2062_v18, 0  ;;  %v2054_v24 = vcombine.low %v730_v19, %v730_v19  ;;  %v940_v27 = vsel %vm797_vm2, %v2063_v22, 0  ;;  %v2055_v32 = vcombine.high %v730_v19, %v730_v19 }
 0x2eb   : > { %2265 = vmatpush3.bf16.xpose.msra.mxu1 %v894_v20  ;;  %v757_v26 = vpop.permute.xlu0 %756 }
 0x2ec   : > { %2270 = vmatprep.subr.bf16.mxu1 %v2757_v5  ;;  %v2066_v29 = vcombine.low %v757_v26, %v757_v26  ;;  %v2067_v37 = vcombine.high %v757_v26, %v757_v26 }
 0x2ed   : > { %v755_v21 = vpop.permute.xlu1 %754 }
 0x2ee   : > { %v2064_v23 = vcombine.low %v755_v21, %v755_v21  ;;  %v2065_v30 = vcombine.high %v755_v21, %v755_v21  ;;  %v1078_v33 = vsel %vm797_vm2, %v2066_v29, 0  ;;  %v1124_v41 = vsel %vm797_vm2, %v2067_v37, 0 }
 0x2f0   : > { %v986_v25 = vsel %vm797_vm2, %v2064_v23, 0  ;;  %v1032_v34 = vsel %vm797_vm2, %v2065_v30, 0 }
 0x2f1   : > { %2277 = vmatpush3.bf16.xpose.msra.mxu0 %v986_v25  ;;  %v732_v28 = vpop.permute.xlu1 %731 }
 0x2f2   : > { %2267 = vmatmul.mubr.msk.bf16.vlgmr.msra.gmra.mxu1 %vm797_vm2, %v2054_v24  ;;  %2288 = vmatprep.subr.bf16.mxu0 %v2757_v5  ;;  %v2056_v31 = vcombine.low %v732_v28, %v732_v28  ;;  %v2057_v39 = vcombine.high %v732_v28, %v732_v28 }
 0x2f3   : > { %2271 = vmatpush3.bf16.xpose.msra.mxu1 %v940_v27  ;;  %2272 = vmatprep.mubr.msk.bf16.mxu1 %vm2758_vm1, %v2757_v5 }
 0x2f4   : > { %2282 = vmatprep.subr.bf16.mxu1 %v2757_v5 }
 0x2f5   : > { %v734_v35 = vpop.permute.xlu1 %733 }
 0x2f6   : > { %v2058_v38 = vcombine.low %v734_v35, %v734_v35  ;;  %v2059_v43 = vcombine.high %v734_v35, %v734_v35 }
 0x2f8   : > { %2279 = vmatmul.mubr.msk.bf16.vlgmr.msra.gmra.mxu0 %vm797_vm2, %v2056_v31 }
 0x2f9   : > { %2289 = vmatpush3.bf16.xpose.msra.mxu0 %v1078_v33  ;;  %2290 = vmatprep.mubr.msk.bf16.mxu0 %vm2758_vm1, %v2757_v5 }
 0x2fa   : > { %2273 = vmatmul.mubr.msk.bf16.vlgmr.msra.gmra.mxu1 %vm797_vm2, %v2055_v32  ;;  %2300 = vmatprep.subr.bf16.mxu0 %v2757_v5 }
 0x2fb   : > { %2283 = vmatpush3.bf16.xpose.msra.mxu1 %v1032_v34  ;;  %2284 = vmatprep.mubr.msk.bf16.mxu1 %vm2758_vm1, %v2757_v5 }
 0x2fc   : > { %2294 = vmatprep.subr.bf16.mxu1 %v2757_v5 }
 0x300   : > { %2291 = vmatmul.mubr.msk.bf16.vlgmr.msra.gmra.mxu0 %vm797_vm2, %v2058_v38 }
 0x301   : > { %2301 = vmatpush3.bf16.msra.mxu0 %v1268_v40  ;;  %2302 = vmatprep.mubr.msk.bf16.mxu0 %vm2758_vm1, %v2757_v5 }
 0x302   : > { %2285 = vmatmul.mubr.msk.bf16.vlgmr.msra.gmra.mxu1 %vm797_vm2, %v2057_v39  ;;  %2312 = vmatprep.subr.bf16.mxu0 %v2757_v5 }
 0x303   : > { %2295 = vmatpush3.bf16.xpose.msra.mxu1 %v1124_v41  ;;  %2296 = vmatprep.mubr.msk.bf16.mxu1 %vm2758_vm1, %v2757_v5 }
 0x304   : > { %2306 = vmatprep.subr.bf16.mxu1 %v2757_v5 }
 0x30a   : > { %2297 = vmatmul.mubr.msk.bf16.vlgmr.msra.gmra.mxu1 %vm797_vm2, %v2059_v43 }
 0x30b   : > { %2307 = vmatpush3.bf16.msra.mxu1 %v1314_v44  ;;  %2308 = vmatprep.mubr.msk.bf16.mxu1 %vm2758_vm1, %v2757_v5 }
 0x30c   : > { %2318 = vmatprep.subr.bf16.mxu1 %v2757_v5 }
 0x339   : > { %v838_v45 = vpop.f32.mrf.mxu1 }
 0x33a   : > { %v1167_v46 = vsel %vm1166_vm4, %v838_v45, -inf }
 0x33b   : > { %1168 = vmax.xlane.f32.xlu0 %v1167_v46  ;;  %v2256_v47 = vpop.f32.mrf.mxu1 }
 0x33d   : > { %v841_v48 = vpop.f32.mrf.mxu1 }
 0x33f   : > { %v2257_v49 = vpop.f32.mrf.mxu1 }
 0x341   : > { %v884_v50 = vpop.f32.mrf.mxu1 }
 0x342   : > { %v1170_v51 = vsel %vm1166_vm4, %v884_v50, -inf }
 0x343   : > { %v2262_v52 = vpop.f32.mrf.mxu1  ;;  %1171 = vmax.xlane.f32.xlu1 %v1170_v51 }
 0x345   : > { %v887_v53 = vpop.f32.mrf.mxu1 }
 0x347   : > { %v2263_v54 = vpop.f32.mrf.mxu1 }
 0x3b2   : > { %v930_v55 = vpop.f32.mrf.mxu1 }
 0x3b3   : > { %v1173_v56 = vsel %vm1166_vm4, %v930_v55, -inf }
 0x3b4   : > { %1174 = vmax.xlane.f32.xlu0 %v1173_v56  ;;  %v2268_v57 = vpop.f32.mrf.mxu1 }
 0x3b6   : > { %v933_v58 = vpop.f32.mrf.mxu1 }
 0x3b8   : > { %v2269_v59 = vpop.f32.mrf.mxu1  ;;  %v1022_v60 = vpop.f32.mrf.mxu0 }
 0x3b9   : > { %v1179_v4 = vsel %vm1166_vm4, %v1022_v60, -inf }
 0x3ba   : > { %v976_v61 = vpop.f32.mrf.mxu1  ;;  %v2280_v62 = vpop.f32.mrf.mxu0 }
 0x3bb   : > { %v1176_v63 = vsel %vm1166_vm4, %v976_v61, -inf }
 0x3bc   : > { %1177 = vmax.xlane.f32.xlu0 %v1176_v63  ;;  %v2274_v0 = vpop.f32.mrf.mxu1  ;;  %v1025_v1 = vpop.f32.mrf.mxu0 }
 0x3be   : > { %v979_v2 = vpop.f32.mrf.mxu1  ;;  %v2281_v3 = vpop.f32.mrf.mxu0 }
 0x3c0   : > { %v2275_v6 = vpop.f32.mrf.mxu1  ;;  %1180 = vmax.xlane.f32.xlu0 %v1179_v4  ;;  %v1114_v7 = vpop.f32.mrf.mxu0 }
 0x3c1   : > { %v1185_v11 = vsel %vm1166_vm4, %v1114_v7, -inf }
 0x3c2   : > { %v3077_v8 = vpop.f32.mrf.mxu1  ;;  %v2292_v9 = vpop.f32.mrf.mxu0 }
 0x3c3   : > { %v1182_v10 = vsel %vm1166_vm4, %v3077_v8, -inf }
 0x3c4   : > { %v1169_v12 = vpop.xlane.xlu0 %1168  ;;  %1183 = vmax.xlane.f32.xlu1 %v1182_v10  ;;  %v2286_v13 = vpop.f32.mrf.mxu1  ;;  %1186 = vmax.xlane.f32.xlu0 %v1185_v11 }
 0x3c5   : > { %v1191_v14 = vsub.f32 %v838_v45, %v1169_v12  ;;  %v1117_v16 = vpop.f32.mrf.mxu0 }
 0x3c6   : > { %v1071_v17 = vpop.f32.mrf.mxu1 }
 0x3c7   : > { %v1199_v18 = vmul.f32 1.442695, %v1191_v14  ;;  %v2293_v19 = vpop.f32.mrf.mxu0 }
 0x3c8   : > { %v2287_v20 = vpop.f32.mrf.mxu1 }
 0x3c9   : > { %2512 = vpow2.f32 %v1199_v18 }
 0x3ca   : > { %v3082_v21 = vpop.f32.mrf.mxu1 }
 0x3cb   : > { %v1188_v22 = vsel %vm1166_vm4, %v3082_v21, -inf }
 0x3cc   : > { %1189 = vmax.xlane.f32.xlu1 %v1188_v22  ;;  %v2298_v23 = vpop.f32.mrf.mxu1  ;;  %v1172_v24 = vpop.xlane.xlu1 %1171 }
 0x3cd   : > { %v1192_v25 = vsub.f32 %v884_v50, %v1172_v24 }
 0x3ce   : > { %v1163_v26 = vpop.f32.mrf.mxu1 }
 0x3cf   : > { %v1201_v27 = vmul.f32 1.442695, %v1192_v25 }
 0x3d0   : > { %v2299_v28 = vpop.f32.mrf.mxu1 }
 0x3d1   : > { %2514 = vpow2.f32 %v1201_v27 }
 0x3d6   : > { %v2513_v29 = vpop.eup %2512 }
 0x3d7   : > { %v1215_v30 = vsel %vm1166_vm4, %v2513_v29, 0.0 }
 0x3d8   : > { %1216 = vadd.xlane.f32.xlu0 %v1215_v30 }
 0x3de   : > { %v2515_v31 = vpop.eup %2514 }
 0x3df   : > { %v1218_v32 = vsel %vm1166_vm4, %v2515_v31, 0.0 }
 0x3e0   : > { %1219 = vadd.xlane.f32.xlu1 %v1218_v32 }
 0x43d   : > { %v1175_v33 = vpop.xlane.xlu0 %1174 }
 0x43e   : > { %v1193_v34 = vsub.f32 %v930_v55, %v1175_v33 }
 0x440   : > { %v1203_v35 = vmul.f32 1.442695, %v1193_v34 }
 0x442   : > { %2516 = vpow2.f32 %v1203_v35 }
 0x445   : > { %v1178_v36 = vpop.xlane.xlu0 %1177 }
 0x446   : > { %v1194_v37 = vsub.f32 %v976_v61, %v1178_v36 }
 0x448   : > { %v1205_v38 = vmul.f32 1.442695, %v1194_v37 }
 0x449   : > { %v1181_v39 = vpop.xlane.xlu0 %1180 }
 0x44a   : > { %2518 = vpow2.f32 %v1205_v38  ;;  %v1195_v40 = vsub.f32 %v1022_v60, %v1181_v39  ;;  %v2500_v38 = vld [vmem:[#allocation10 + $0x8] sm:$0xff]  }
 0x44c   : > { %v1207_v41 = vmul.f32 1.442695, %v1195_v40 }
 0x44d   : > { %v1187_v42 = vpop.xlane.xlu0 %1186  ;;  %v1184_v52 = vpop.xlane.xlu1 %1183 }
 0x44e   : > { %2520 = vpow2.f32 %v1207_v41  ;;  %v1197_v43 = vsub.f32 %v1114_v7, %v1187_v42  ;;  %v1196_v60 = vsub.f32 %v3077_v8, %v1184_v52 }
 0x44f   : > { %v2517_v44 = vpop.eup %2516 }
 0x450   : > { %v1211_v45 = vmul.f32 1.442695, %v1197_v43  ;;  %v1221_v46 = vsel %vm1166_vm4, %v2517_v44, 0.0  ;;  %v1209_v63 = vmul.f32 1.442695, %v1196_v60  ;;  %v2504_v60 = vld [vmem:[#allocation10 + $0x28] sm:$0xff]  }
 0x451   : > { %1222 = vadd.xlane.f32.xlu0 %v1221_v46 }
 0x452   : > { %2522 = vpow2.f32 %v1211_v45 }
 0x455   : > { %v1190_v55 = vpop.xlane.xlu1 %1189 }
 0x456   : > { %v1198_v0 = vsub.f32 %v3082_v21, %v1190_v55 }
 0x457   : > { %v2519_v47 = vpop.eup %2518 }
 0x458   : > { %v1224_v48 = vsel %vm1166_vm4, %v2519_v47, 0.0  ;;  %v1213_v2 = vmul.f32 1.442695, %v1198_v0  ;;  %v2506_v0 = vld [vmem:[#allocation10 + $0x38] sm:$0xff]  }
 0x459   : > { %1225 = vadd.xlane.f32.xlu1 %v1224_v48  ;;  %v2502_v48 = vld [vmem:[#allocation10 + $0x18] sm:$0xff]  }
 0x45b   : > { %v3090_v49 = vpop.eup %2520 }
 0x45c   : > { %v1227_v50 = vsel %vm1166_vm4, %v3090_v49, 0.0 }
 0x45d   : > { %1228 = vadd.xlane.f32.xlu0 %v1227_v50 }
 0x45f   : > { %v3094_v51 = vpop.eup %2522 }
 0x460   : > { %v1233_v53 = vsel %vm1166_vm4, %v3094_v51, 0.0 }
 0x461   : > { %v1217_v54 = vpop.xlane.xlu0 %1216  ;;  %1234 = vadd.xlane.f32.xlu0 %v1233_v53 }
 0x462   : > { %2524 = vrcp.f32 %v1217_v54 }
 0x469   : > { %v1220_v56 = vpop.xlane.xlu1 %1219 }
 0x46a   : > { %2526 = vrcp.f32 %v1220_v56  ;;  %777 = vrot.lane.b32.xlu1 %v3036_v15, %s2761_s16 }
 0x46b   : > { %2528 = vpow2.f32 %v1209_v63 }
 0x46c   : > { %2530 = vpow2.f32 %v1213_v2 }
 0x46f   : > { %v2525_v57 = vpop.eup %2524 }
 0x470   : > { %v1247_v58 = vmul.f32 %v2525_v57, %v2513_v29 }
 0x472   : > { %v1255_v59 = vpack.c.bf16 %v1247_v58, %v1247_v58 }
 0x474   : > { %2303 = vmatmul.mubr.msk.bf16.vlgmr.msra.gmra.mxu0 %vm1166_vm4, %v1255_v59 }
 0x475   : > { %2314 = vmatprep.mubr.msk.bf16.mxu0 %vm2758_vm1, %v2757_v5 }
 0x477   : > { %v2527_v61 = vpop.eup %2526  ;;  %775 = vrot.lane.b32.xlu0 %v3036_v15, %s2759_s22 }
 0x478   : > { %v1248_v62 = vmul.f32 %v2527_v61, %v2515_v31  ;;  %v3110_v3 = vpop.eup %2528  ;;  %v2505_v61 = vld [vmem:[#allocation10 + $0x20] sm:$0xff]  }
 0x479   : > { %v1230_v4 = vsel %vm1166_vm4, %v3110_v3, 0.0  ;;  %v3114_v6 = vpop.eup %2530 }
 0x47a   : > { %v1256_v1 = vpack.c.bf16 %v1248_v62, %v1248_v62  ;;  %v1236_v7 = vsel %vm1166_vm4, %v3114_v6, 0.0 }
 0x47c   : > { %2309 = vmatmul.mubr.msk.bf16.vlgmr.msra.gmra.mxu1 %vm1166_vm4, %v1256_v1 }
 0x47d   : > { %2320 = vmatprep.mubr.msk.bf16.mxu1 %vm2758_vm1, %v2757_v5 }
 0x48e   : > { %1231 = vadd.xlane.f32.xlu1 %v1230_v4 }
 0x492   : > { %1237 = vadd.xlane.f32.xlu1 %v1236_v7  ;;  %v2507_v7 = vld [vmem:[#allocation10 + $0x30] sm:$0xff]  }
 0x4a3   : > { %779 = vrot.lane.b32.xlu1 %v3036_v15, %s2760_s12 }
 0x4da   : > { %v1223_v8 = vpop.xlane.xlu0 %1222 }
 0x4db   : > { %2532 = vrcp.f32 %v1223_v8 }
 0x4e2   : > { %v1226_v9 = vpop.xlane.xlu1 %1225 }
 0x4e3   : > { %2534 = vrcp.f32 %v1226_v9 }
 0x4e6   : > { %v1229_v10 = vpop.xlane.xlu0 %1228  ;;  %v778_v13 = vpop.permute.xlu1 %777 }
 0x4e7   : > { %2536 = vrcp.f32 %v1229_v10  ;;  %v2072_v21 = vcombine.low %v778_v13, %v778_v13  ;;  %v2073_v22 = vcombine.high %v778_v13, %v778_v13 }
 0x4e8   : > { %v2533_v12 = vpop.eup %2532 }
 0x4e9   : > { %v1249_v19 = vmul.f32 %v2533_v12, %v2517_v44  ;;  %v1452_v27 = vsel %vm1266_vm3, %v2072_v21, 0  ;;  %v1498_v28 = vsel %vm1266_vm3, %v2073_v22, 0  ;;  %v2501_v44 = vld [vmem:[#allocation10] sm:$0xff]  }
 0x4ea   : > { %v1235_v11 = vpop.xlane.xlu0 %1234 }
 0x4eb   : > { %v1257_v25 = vpack.c.bf16 %v1249_v19, %v1249_v19  ;;  %2538 = vrcp.f32 %v1235_v11 }
 0x4ee   : > { %v776_v14 = vpop.permute.xlu0 %775 }
 0x4ef   : > { %v2070_v17 = vcombine.low %v776_v14, %v776_v14  ;;  %v2071_v18 = vcombine.high %v776_v14, %v776_v14 }
 0x4f0   : > { %v2535_v16 = vpop.eup %2534 }
 0x4f1   : > { %v1250_v20 = vmul.f32 %v2535_v16, %v2519_v47  ;;  %v1360_v23 = vsel %vm1266_vm3, %v2070_v17, 0  ;;  %v1406_v15 = vsel %vm1266_vm3, %v2071_v18, 0 }
 0x4f2   : > { %2313 = vmatpush3.bf16.msra.mxu0 %v1360_v23  ;;  %2319 = vmatpush3.bf16.msra.mxu1 %v1406_v15 }
 0x4f3   : > { %v1258_v24 = vpack.c.bf16 %v1250_v20, %v1250_v20  ;;  %2324 = vmatprep.subr.bf16.mxu0 %v2757_v5  ;;  %2330 = vmatprep.subr.bf16.mxu1 %v2757_v5 }
 0x4f4   : > { %v2537_v26 = vpop.eup %2536 }
 0x4f5   : > { %2315 = vmatmul.mubr.msk.bf16.vlgmr.msra.gmra.mxu0 %vm1166_vm4, %v1257_v25  ;;  %2321 = vmatmul.mubr.msk.bf16.vlgmr.msra.gmra.mxu1 %vm1166_vm4, %v1258_v24  ;;  %v1251_v29 = vmul.f32 %v2537_v26, %v3090_v49 }
 0x4f6   : > { %2325 = vmatpush3.bf16.msra.mxu0 %v1452_v27  ;;  %2331 = vmatpush3.bf16.msra.mxu1 %v1498_v28 }
 0x4f7   : > { %2326 = vmatprep.mubr.msk.bf16.mxu0 %vm2758_vm1, %v2757_v5  ;;  %2336 = vmatprep.subr.bf16.mxu0 %v2757_v5  ;;  %v1259_v30 = vpack.c.bf16 %v1251_v29, %v1251_v29 }
 0x4f8   : > { %2332 = vmatprep.mubr.msk.bf16.mxu1 %vm2758_vm1, %v2757_v5  ;;  %2342 = vmatprep.subr.bf16.mxu1 %v2757_v5  ;;  %v2539_v33 = vpop.eup %2538 }
 0x4f9   : > { %v1253_v36 = vmul.f32 %v2539_v33, %v3094_v51  ;;  %v2503_v51 = vld [vmem:[#allocation10 + $0x10] sm:$0xff]  }
 0x4fb   : > { %v1261_v39 = vpack.c.bf16 %v1253_v36, %v1253_v36 }
 0x4fd   : > { %2327 = vmatmul.mubr.msk.bf16.vlgmr.msra.gmra.mxu0 %vm1166_vm4, %v1259_v30 }
 0x4fe   : > { %2338 = vmatprep.mubr.msk.bf16.mxu0 %vm2758_vm1, %v2757_v5 }
 0x517   : > { %v1232_v31 = vpop.xlane.xlu1 %1231 }
 0x518   : > { %2540 = vrcp.f32 %v1232_v31 }
 0x51b   : > { %v1238_v32 = vpop.xlane.xlu1 %1237 }
 0x51c   : > { %2542 = vrcp.f32 %v1238_v32 }
 0x51f   : > { %v780_v34 = vpop.permute.xlu1 %779 }
 0x520   : > { %v2074_v35 = vcombine.low %v780_v34, %v780_v34  ;;  %v2075_v41 = vcombine.high %v780_v34, %v780_v34 }
 0x522   : > { %v1544_v37 = vsel %vm1266_vm3, %v2074_v35, 0  ;;  %v1590_v46 = vsel %vm1266_vm3, %v2075_v41, 0 }
 0x523   : > { %2337 = vmatpush3.bf16.msra.mxu0 %v1544_v37 }
 0x524   : > { %2348 = vmatprep.subr.bf16.mxu0 %v2757_v5 }
 0x525   : > { %v2541_v40 = vpop.eup %2540 }
 0x526   : > { %2339 = vmatmul.mubr.msk.bf16.vlgmr.msra.gmra.mxu0 %vm1166_vm4, %v1261_v39  ;;  %v1252_v42 = vmul.f32 %v2541_v40, %v3110_v3 }
 0x527   : > { %2349 = vmatpush3.bf16.msra.mxu0 %v2500_v38  ;;  %2352 = vmatprep.mubr.msk.bf16.mxu0 %vm2758_vm1, %v2757_v5 }
 0x528   : > { %v1260_v43 = vpack.c.bf16 %v1252_v42, %v1252_v42  ;;  %2350 = vmatprep.subr.bf16.mxu0 %v2757_v5 }
 0x529   : > { %v2543_v45 = vpop.eup %2542 }
 0x52a   : > { %2333 = vmatmul.mubr.msk.bf16.vlgmr.msra.gmra.mxu1 %vm1166_vm4, %v1260_v43  ;;  %v1254_v47 = vmul.f32 %v2543_v45, %v3114_v6 }
 0x52b   : > { %2343 = vmatpush3.bf16.msra.mxu1 %v1590_v46  ;;  %2344 = vmatprep.mubr.msk.bf16.mxu1 %vm2758_vm1, %v2757_v5 }
 0x52c   : > { %2351 = vmatpush3.bf16.msra.mxu0 %v2501_v44  ;;  %2356 = vmatprep.subr.bf16.mxu1 %v2757_v5  ;;  %v1262_v49 = vpack.c.bf16 %v1254_v47, %v1254_v47 }
 0x52d   : > { %2364 = vmatprep.subr.bf16.mxu0 %v2757_v5 }
 0x532   : > { %2345 = vmatmul.mubr.msk.bf16.vlgmr.msra.gmra.mxu1 %vm1166_vm4, %v1262_v49 }
 0x533   : > { %2357 = vmatpush3.bf16.msra.mxu1 %v2502_v48  ;;  %2360 = vmatprep.mubr.msk.bf16.mxu1 %vm2758_vm1, %v2757_v5 }
 0x534   : > { %v1304_v50 = vpop.f32.mrf.mxu0  ;;  %2358 = vmatprep.subr.bf16.mxu1 %v2757_v5 }
 0x536   : > { %v2304_v52 = vpop.f32.mrf.mxu0 }
 0x537   : > { %2359 = vmatpush3.bf16.msra.mxu1 %v2503_v51 }
 0x538   : > { %v1307_v53 = vpop.f32.mrf.mxu0  ;;  %2372 = vmatprep.subr.bf16.mxu1 %v2757_v5 }
 0x53a   : > { %v2305_v54 = vpop.f32.mrf.mxu0 }
 0x53c   : > { %v1350_v55 = vpop.f32.mrf.mxu1 }
 0x53d   : > { %v1632_v56 = vpack.c.bf16 %v1350_v55, %v1304_v50 }
 0x53e   : > { %v2310_v57 = vpop.f32.mrf.mxu1 }
 0x53f   : > { %2353 = vmatmul.mubr.msk.bf16.vlgmr.msra.gmra.mxu0 %vm797_vm2, %v1632_v56 }
 0x540   : > { %v1353_v58 = vpop.f32.mrf.mxu1  ;;  %2368 = vmatprep.mubr.msk.bf16.mxu0 %vm2758_vm1, %v2757_v5  ;;  %2365 = vmatpush3.bf16.msra.mxu0 %v2504_v60 }
 0x541   : > { %2366 = vmatprep.subr.bf16.mxu0 %v2757_v5 }
 0x542   : > { %v2311_v59 = vpop.f32.mrf.mxu1 }
 0x544   : > { %2367 = vmatpush3.bf16.msra.mxu0 %v2505_v61 }
 0x5b5   : > { %v1396_v62 = vpop.f32.mrf.mxu0  ;;  %v1442_v63 = vpop.f32.mrf.mxu1 }
 0x5b6   : > { %v1633_v1 = vpack.c.bf16 %v1442_v63, %v1396_v62 }
 0x5b7   : > { %v2316_v2 = vpop.f32.mrf.mxu0  ;;  %v2322_v3 = vpop.f32.mrf.mxu1 }
 0x5b8   : > { %2361 = vmatmul.mubr.msk.bf16.vlgmr.msra.gmra.mxu1 %vm797_vm2, %v1633_v1 }
 0x5b9   : > { %v1399_v4 = vpop.f32.mrf.mxu0  ;;  %v1445_v6 = vpop.f32.mrf.mxu1  ;;  %2373 = vmatpush3.bf16.msra.mxu1 %v2506_v0  ;;  %2376 = vmatprep.mubr.msk.bf16.mxu1 %vm2758_vm1, %v2757_v5 }
 0x5ba   : > { %2374 = vmatprep.subr.bf16.mxu1 %v2757_v5 }
 0x5bb   : > { %v2317_v8 = vpop.f32.mrf.mxu0  ;;  %v2323_v9 = vpop.f32.mrf.mxu1 }
 0x5bd   : > { %v1488_v10 = vpop.f32.mrf.mxu0  ;;  %2375 = vmatpush3.bf16.msra.mxu1 %v2507_v7 }
 0x5bf   : > { %v2328_v11 = vpop.f32.mrf.mxu0 }
 0x5c1   : > { %v1491_v12 = vpop.f32.mrf.mxu0 }
 0x5c3   : > { %v2329_v13 = vpop.f32.mrf.mxu0 }
 0x5e6   : > { %v1580_v14 = vpop.f32.mrf.mxu0 }
 0x5e8   : > { %v2340_v16 = vpop.f32.mrf.mxu0 }
 0x5ea   : > { %v1534_v17 = vpop.f32.mrf.mxu1  ;;  %v1583_v18 = vpop.f32.mrf.mxu0 }
 0x5eb   : > { %v1634_v19 = vpack.c.bf16 %v1534_v17, %v1488_v10 }
 0x5ec   : > { %v2334_v20 = vpop.f32.mrf.mxu1  ;;  %v2341_v21 = vpop.f32.mrf.mxu0 }
 0x5ed   : > { %2369 = vmatmul.mubr.msk.bf16.vlgmr.msra.gmra.mxu0 %vm797_vm2, %v1634_v19 }
 0x5ee   : > { %v1537_v22 = vpop.f32.mrf.mxu1 }
 0x5f0   : > { %v2335_v23 = vpop.f32.mrf.mxu1 }
 0x5f2   : > { %v1626_v15 = vpop.f32.mrf.mxu1 }
 0x5f3   : > { %v1635_v5 = vpack.c.bf16 %v1626_v15, %v1580_v14 }
 0x5f4   : > { %v2346_v24 = vpop.f32.mrf.mxu1 }
 0x5f5   : > { %2377 = vmatmul.mubr.msk.bf16.vlgmr.msra.gmra.mxu1 %vm797_vm2, %v1635_v5 }
 0x5f6   : > { %v1629_v25 = vpop.f32.mrf.mxu1 }
 0x5f8   : > { %v2347_v26 = vpop.f32.mrf.mxu1 }
 0x5ff   : > { %v1701_v27 = vpop.f32.mrf.mxu0 }
 0x601   : > { %v2354_v28 = vpop.f32.mrf.mxu0 }
 0x603   : > { %v1704_v29 = vpop.f32.mrf.mxu0 }
 0x605   : > { %v2355_v30 = vpop.f32.mrf.mxu0 }
 0x678   : > { %v1757_v31 = vpop.f32.mrf.mxu1 }
 0x679   : > { %v1876_v38 = vadd.f32 %v1757_v31, %v1701_v27 }
 0x67a   : > { %v2362_v32 = vpop.f32.mrf.mxu1 }
 0x67c   : > { %v1760_v33 = vpop.f32.mrf.mxu1 }
 0x67d   : > { %v1879_v42 = vadd.f32 %v1760_v33, %v1704_v29 }
 0x67e   : > { %v2363_v34 = vpop.f32.mrf.mxu1 }
 0x6ad   : > { %v1813_v35 = vpop.f32.mrf.mxu0 }
 0x6ae   : > { %v1877_v40 = vadd.f32 %v1876_v38, %v1813_v35 }
 0x6af   : > { %v2370_v36 = vpop.f32.mrf.mxu0 }
 0x6b1   : > { %v1816_v37 = vpop.f32.mrf.mxu0 }
 0x6b2   : > { %v1880_v45 = vadd.f32 %v1879_v42, %v1816_v37 }
 0x6b3   : > { %v2371_v39 = vpop.f32.mrf.mxu0 }
 0x6b5   : > { %v1869_v41 = vpop.f32.mrf.mxu1 }
 0x6b6   : > { %v1878_v43 = vadd.f32 %v1877_v40, %v1869_v41 }
 0x6b7   : > { %v2378_v44 = vpop.f32.mrf.mxu1 }
 0x6b8   : > { %1882 = vst [vmem:[%s354_s13] sm:$0xff] %v1878_v43 }
 0x6b9   : > { %v1872_v46 = vpop.f32.mrf.mxu1 }
 0x6ba   : > { %v1881_v47 = vadd.f32 %v1880_v45, %v1872_v46 }
 0x6bb   : > { %v2379_v48 = vpop.f32.mrf.mxu1 }
 0x6bc   : > { %1883 = vst [vmem:[%s354_s13 + $0x8] sm:$0xff] %v1881_v47 }
 0x6bd   : > { %2689 = shalt.err (!%p2686_p3)
}
 0x6be   : > { %s2690_s22 = scalar_lea.hbm %s3175_s15, 256  ;;  %s2694_s10 = scalar_lea.hbm %s3224_s7, 1024 }
 0x6bf   : > { %p2691_p6 = scmp.ne.s32.totalorder %s3175_s15, %s2690_s22  ;;  %p2695_p9 = scmp.lt.s32.totalorder %s3175_s15, %s3224_s7 }
 0x6c0   : > { %p2696_p2 = scmp.lt.s32.totalorder %s2694_s10, %s2690_s22 }
 0x6c1   : > { %p2692_p4 = pnand %p2691_p6, %p3247_p11 }
 0x6c2   : > { %p2697_p0 = por %p2696_p2, %p2695_p9 }
 0x6c3   : > { %p2693_p8 = pneg %p2692_p4 }
 0x6c5   : > { %p2698_p5 = pnand %p2697_p0, %p2693_p8 }
 0x6c7   : > { %2701 = shalt.err (!%p2698_p5)
}
 0x6c8   : > { %s2763_s3 = smov 128   ;;  %s2764_s11 = smov 8  }
 0x6c9   : > { %2398 = dma.vmem_to_hbm [thread:$0]  (%p3247_p11), %s3170_s18, 256, %s3175_s15, %s1885_s30, %s2763_s3, %s2763_s3, %s2764_s11  }
 0x6ca PF: > { %p2430_p7 = scmp.ge.s32.totalorder %s2748_s27, 2  ;;  %s1913_s9 = sand.u32 1, %s2736_s24  }
 0x6cb   : > { %p3248_p1 = scmp.ne.s32.totalorder %s3233_s8, 0  ;;  %s1914_s28 = scalar_lea.sflag [#allocation4], %s1913_s9 }
 0x6cd   : > { %p2418_p12 = pnand %p2430_p7, %p3248_p1 }
 0x6cf   : > { %p2419_p13 = pneg %p2418_p12 }
 0x6d1   : > { %2731 = dma.done.wait (%p2419_p13), %s1914_s28, 256  }
 0x6d2   : > { %2733 = vsyncadd (%p2419_p13), %s1914_s28, 4294967040  ;;  %p22_p10 = scmp.ge.s32.totalorder %s2904_s21, 6   ;;  %s3249_s24 = smov %s2740_s25 }
 0x6d3   : > { %s3250_s25 = smov %s2744_s26  ;;  %s3251_s26 = smov %s2920_s29 }
 0x6d4   : > { %s3252_s27 = smov %s2904_s21  ;;  %24 = sbr.rel (!%p22_p10) target bundleno = 9 (0x9), region = 109 }
 0x6d9   :  { %1919 = vsyncpa [#allocation3], 1 }
 0x6da   :  { %1921 = vsyncpa [#allocation3 + $0x1], 1 }
 0x6db   :  { %1922 = vsyncpa [#allocation6], 1 }
 0x6dc   :  { %1923 = vsyncpa [#allocation9], 1 }
 0x6dd   :  { %1924 = vsyncpa [#allocation4], 1 }
 0x6de   :  { %1926 = vsyncpa [#allocation4 + $0x1], 1 }

</bundles_post_ra>
